<compile_context>
chip_gen: v7x
topology: tpu7x:2x2x1
jax: 0.10.0
libtpu: 0.0.40
codegen_flags: <defaults>
</compile_context>

<pallas_src>
import functools

import jax
import jax.numpy as jnp
from jax import lax
from jax.experimental import pallas as pl
from jax.experimental.pallas import tpu as pltpu


def residual_conv_kernel(x_ref, w_ref, b_ref, o_ref, *, D, n_dim):
    """One batch block per grid step.

    x_ref : (M, K)        M = B_blk*D rows, K = H*W*Cin (lane-dense)
    w_ref : (K, 4*n_dim)  columns = [kd=1 (center) | kd=0 | kd=2 | 1x1x1 residual]
    b_ref : (2, n_dim)    rows = [fused BN(+bias) main branch | residual branch]
    o_ref : (M, n_dim)    output rows, lane-dense H*W*Cout
    """
    M = x_ref.shape[0]

    # Single well-fed MXU contraction for all three depth taps + residual branch.
    y = jnp.dot(x_ref[...], w_ref[...], preferred_element_type=jnp.float32)

    y_c = y[:, 0 * n_dim:1 * n_dim]    # kd = 1 (center depth tap)
    y_m = y[:, 1 * n_dim:2 * n_dim]    # kd = 0 (from depth row d-1)
    y_p = y[:, 2 * n_dim:3 * n_dim]    # kd = 2 (from depth row d+1)
    y_r = y[:, 3 * n_dim:4 * n_dim]    # 1x1x1 residual branch

    # Depth shifts post-matmul: XLU sublane roll + mask of the zero-padded rows
    # (d == 0 / d == D-1), which also kills cross-batch leakage inside the block.
    d_idx = lax.broadcasted_iota(jnp.int32, (M, n_dim), 0) % D
    y_m = jnp.where(d_idx == 0, 0.0, pltpu.roll(y_m, shift=1, axis=0))
    # shift "up" by one row == roll by M-1 (non-negative static shift)
    y_p = jnp.where(d_idx == D - 1, 0.0, pltpu.roll(y_p, shift=M - 1, axis=0))

    y3 = jnp.maximum(y_c + y_m + y_p + b_ref[0:1, :], 0.0)   # main: conv+BN+ReLU
    o_ref[...] = (y3 + y_r + b_ref[1:2, :]).astype(o_ref.dtype)


def _shift_selectors(n):
    """sel[k, p, q] = 1. iff p == q + k - 1  (3-tap, zero-padded conv selector)."""
    idx = jnp.arange(n)
    return jnp.stack([(idx[:, None] == idx[None, :] + k - 1).astype(jnp.float32)
                      for k in range(3)])


def prepare_residual_conv_params(params, H, W, eps=1e-5):
    """One-time layout plumbing (hoist out of the per-forward path).

    Folds conv bias + eval-mode BN into the conv weights, builds the banded
    3x3x3 weights (kh/kw taps and H/W zero padding baked in), the block-diagonal
    1x1x1 residual weight, and concatenates everything into one (K, 4*N) matmul
    weight plus a (2, N) fused-bias block.
    """
    (w3, bc3, g3, be3, rm3, rv3,
     w1, bc1, g1, be1, rm1, rv1) = params
    Cin, Cout = w3.shape[-2], w3.shape[-1]
    k_dim, n_dim = H * W * Cin, H * W * Cout

    s3 = g3 / jnp.sqrt(rv3 + eps)
    s1 = g1 / jnp.sqrt(rv1 + eps)
    w3s = w3 * s3                                   # (3,3,3,Cin,Cout)
    w1s = w1 * s1                                   # (Cin,Cout)
    b3_row = jnp.tile(be3 + (bc3 - rm3) * s3, H * W).reshape(1, n_dim)
    b1_row = jnp.tile(be1 + (bc1 - rm1) * s1, H * W).reshape(1, n_dim)

    sh = _shift_selectors(H)                        # (3, H, H)
    sw = _shift_selectors(W)                        # (3, W, W)
    # Wb[kd, (h_in,w_in,ci), (h,w,co)] = w3s[kd, h_in-h+1, w_in-w+1, ci, co]
    wb = jnp.einsum('apq,brs,dabio->dpriqso', sh, sw, w3s).reshape(3, k_dim, n_dim)
    w1b = jnp.einsum('pq,rs,io->priqso',
                     jnp.eye(H, dtype=w1s.dtype),
                     jnp.eye(W, dtype=w1s.dtype), w1s).reshape(k_dim, n_dim)

    # fused weight columns: [kd=1 center | kd=0 | kd=2 | 1x1x1 residual]
    w_cat = jnp.concatenate([wb[1], wb[0], wb[2], w1b], axis=1)   # (K, 4*N)
    b_rows = jnp.concatenate([b3_row, b1_row], axis=0)            # (2, N)
    return w_cat, b_rows


def _pick_batch_block(n, d, target_rows=256, min_rows=128):
    """Rows per grid step = B_blk*D. Prefer >=2 grid steps (megacore/v7x) while
    each step still feeds the MXU >= min_rows rows; otherwise take the largest
    sublane-legal block under target_rows."""
    divs = [b for b in range(1, n + 1) if n % b == 0]
    legal = [b for b in divs if (b * d) % 8 == 0 or b == n]
    two_step = [b for b in legal
                if b * d <= target_rows and n // b >= 2 and b * d >= min_rows]
    if two_step:
        return max(two_step)
    under = [b for b in legal if b * d <= target_rows]
    return max(under) if under else min(legal)


def residual_conv_block_pallas(x_ndhwc, w_cat, b_rows):
    N, D, H, W, Cin = x_ndhwc.shape
    k_dim = H * W * Cin
    n_dim = b_rows.shape[-1]
    Cout = n_dim // (H * W)
    assert w_cat.shape == (k_dim, 4 * n_dim)

    b_blk = _pick_batch_block(N, D)
    rows = b_blk * D

    # contiguous (free) relayout: NDHWC -> (N*D, H*W*Cin); batch+depth fold -> M.
    x2 = x_ndhwc.reshape(N * D, k_dim)

    kernel = functools.partial(residual_conv_kernel, D=D, n_dim=n_dim)
    out = pl.pallas_call(
        kernel,
        out_shape=jax.ShapeDtypeStruct((N * D, n_dim), x_ndhwc.dtype),
        grid=(N // b_blk,),
        in_specs=[
            pl.BlockSpec((rows, k_dim), lambda b: (b, 0)),
            pl.BlockSpec((k_dim, 4 * n_dim), lambda b: (0, 0)),
            pl.BlockSpec((2, n_dim), lambda b: (0, 0)),
        ],
        out_specs=pl.BlockSpec((rows, n_dim), lambda b: (b, 0)),
        compiler_params=pltpu.CompilerParams(
            dimension_semantics=("parallel",),
            vmem_limit_bytes=32 * 1024 * 1024),
    )(x2, w_cat, b_rows)

    return out.reshape(N, D, H, W, Cout)


def reference(x_ndhwc, params, eps=1e-5):
    """Pure-JAX reference mirroring the PyTorch forward (eval-mode BN)."""
    (w3, bc3, g3, be3, rm3, rv3,
     w1, bc1, g1, be1, rm1, rv1) = params
    dn = ("NDHWC", "DHWIO", "NDHWC")
    y3 = lax.conv_general_dilated(x_ndhwc, w3, (1, 1, 1),
                                  [(1, 1)] * 3, dimension_numbers=dn) + bc3
    y3 = (y3 - rm3) / jnp.sqrt(rv3 + eps) * g3 + be3
    y3 = jnp.maximum(y3, 0.0)
    y1 = lax.conv_general_dilated(x_ndhwc, w1[None, None, None], (1, 1, 1),
                                  [(0, 0)] * 3, dimension_numbers=dn) + bc1
    y1 = (y1 - rm1) / jnp.sqrt(rv1 + eps) * g1 + be1
    return y3 + y1


def init_params(key, nIn, nOut):
    k3, kb3, k1, kb1 = jax.random.split(key, 4)
    w3 = 0.1 * jax.random.normal(k3, (3, 3, 3, nIn, nOut), jnp.float32)   # DHWIO
    bc3 = 0.1 * jax.random.normal(kb3, (nOut,), jnp.float32)
    w1 = 0.1 * jax.random.normal(k1, (nIn, nOut), jnp.float32)            # IO
    bc1 = 0.1 * jax.random.normal(kb1, (nOut,), jnp.float32)
    # BatchNorm3d buffers as at module __init__: gamma=1, beta=0, mean=0, var=1
    g3 = jnp.ones((nOut,), jnp.float32)
    be3 = jnp.zeros((nOut,), jnp.float32)
    rm3 = jnp.zeros((nOut,), jnp.float32)
    rv3 = jnp.ones((nOut,), jnp.float32)
    g1 = jnp.ones((nOut,), jnp.float32)
    be1 = jnp.zeros((nOut,), jnp.float32)
    rm1 = jnp.zeros((nOut,), jnp.float32)
    rv1 = jnp.ones((nOut,), jnp.float32)
    return (w3, bc3, g3, be3, rm3, rv3, w1, bc1, g1, be1, rm1, rv1)


if __name__ == "__main__":
    # Small shapes: N=2, nIn=4, nOut=8, D=4, H=8, W=8 (PyTorch input NCDHW).
    N, nIn, nOut, D, H, W = 2, 4, 8, 4, 8, 8

    key = jax.random.PRNGKey(0)
    kx, kp = jax.random.split(key)
    x_ncdhw = jax.random.normal(kx, (N, nIn, D, H, W), jnp.float32)
    params = init_params(kp, nIn, nOut)

    # NCDHW (PyTorch) -> NDHWC (kernel layout)
    x_ndhwc = jnp.transpose(x_ncdhw, (0, 2, 3, 4, 1))

    # One-time weight preparation (hoisted out of the per-forward path).
    w_cat, b_rows = prepare_residual_conv_params(params, H, W)
    w_cat, b_rows = jax.block_until_ready((w_cat, b_rows))

    out = residual_conv_block_pallas(x_ndhwc, w_cat, b_rows)
    out = jax.block_until_ready(out)

    ref = reference(x_ndhwc, params)
    assert out.shape == (N, D, H, W, nOut)
    assert jnp.allclose(out, ref, atol=1e-4, rtol=1e-4), (
        float(jnp.max(jnp.abs(out - ref))))

    # back to NCDHW to match the PyTorch module's output convention
    out_ncdhw = jnp.transpose(out, (0, 4, 1, 2, 3))
    assert out_ncdhw.shape == (N, nOut, D, H, W)

    print("KERNEL_OK")
</pallas_src>

<mosaic_0001>
module attributes {stable_mosaic.version = 11 : i64} {
  func.func @residual_conv_kernel(%arg0: i32, %arg1: memref<8x256xf32, #tpu.memory_space<vmem>>, %arg2: memref<256x2048xf32, #tpu.memory_space<vmem>>, %arg3: memref<2x512xf32, #tpu.memory_space<vmem>>, %arg4: memref<8x512xf32, #tpu.memory_space<vmem>>) attributes {dimension_semantics = [#tpu.dimension_semantics<parallel>], iteration_bounds = array<i64: 1>, scalar_prefetch = 0 : i64, scratch_operands = 0 : i64, tpu.core_type = #tpu.core_type<tc>, window_params = [{transform_indices = @transform_0, window_bounds = array<i64: 8, 256>}, {pipeline_mode = #tpu.pipeline_mode<synchronous>, transform_indices = @transform_1, window_bounds = array<i64: 256, 2048>}, {pipeline_mode = #tpu.pipeline_mode<synchronous>, transform_indices = @transform_2, window_bounds = array<i64: 2, 512>}, {transform_indices = @transform_3, window_bounds = array<i64: 8, 512>}]} {
    %c0 = arith.constant 0 : index
    %c0_0 = arith.constant 0 : index
    %0 = vector.load %arg1[%c0, %c0_0] : memref<8x256xf32, #tpu.memory_space<vmem>>, vector<8x256xf32>
    %c0_1 = arith.constant 0 : index
    %c0_2 = arith.constant 0 : index
    %1 = vector.load %arg2[%c0_1, %c0_2] : memref<256x2048xf32, #tpu.memory_space<vmem>>, vector<256x2048xf32>
    %cst = arith.constant dense<0.000000e+00> : vector<8x2048xf32>
    %2 = tpu.matmul %0, %1, %cst {dimension_numbers = #tpu.dot_dimension_numbers<[1], [0], [0], [1], [0, 0, 1, 1], [], []>} : vector<8x256xf32>, vector<256x2048xf32>, vector<8x2048xf32> -> vector<8x2048xf32>
    %3 = vector.extract_strided_slice %2 {offsets = [0, 0], sizes = [8, 512], strides = [1, 1]} : vector<8x2048xf32> to vector<8x512xf32>
    %4 = vector.extract_strided_slice %2 {offsets = [0, 512], sizes = [8, 512], strides = [1, 1]} : vector<8x2048xf32> to vector<8x512xf32>
    %5 = vector.extract_strided_slice %2 {offsets = [0, 1024], sizes = [8, 512], strides = [1, 1]} : vector<8x2048xf32> to vector<8x512xf32>
    %6 = vector.extract_strided_slice %2 {offsets = [0, 1536], sizes = [8, 512], strides = [1, 1]} : vector<8x2048xf32> to vector<8x512xf32>
    %7 = tpu.iota {dimensions = array<i32: 0>} : vector<8x512xi32>
    %c4_i32 = arith.constant 4 : i32
    %c0_i32 = arith.constant 0 : i32
    %8 = arith.cmpi eq, %c4_i32, %c0_i32 : i32
    %c1_i32 = arith.constant 1 : i32
    %9 = arith.select %8, %c1_i32, %c4_i32 : i32
    %10 = vector.broadcast %9 : i32 to vector<8x512xi32>
    %11 = arith.remsi %7, %10 : vector<8x512xi32>
    %c0_i32_3 = arith.constant 0 : i32
    %12 = vector.broadcast %c0_i32_3 : i32 to vector<8x512xi32>
    %13 = arith.cmpi ne, %11, %12 : vector<8x512xi32>
    %c0_i32_4 = arith.constant 0 : i32
    %14 = vector.broadcast %c0_i32_4 : i32 to vector<8x512xi32>
    %15 = arith.cmpi slt, %11, %14 : vector<8x512xi32>
    %c0_i32_5 = arith.constant 0 : i32
    %16 = arith.cmpi slt, %9, %c0_i32_5 : i32
    %17 = vector.broadcast %16 : i1 to vector<8x512xi1>
    %18 = vector.broadcast %17 : vector<8x512xi1> to vector<8x512xi1>
    %19 = arith.xori %15, %18 : vector<8x512xi1>
    %20 = arith.andi %19, %13 : vector<8x512xi1>
    %21 = vector.broadcast %9 : i32 to vector<8x512xi32>
    %22 = arith.addi %11, %21 : vector<8x512xi32>
    %23 = arith.select %20, %22, %11 : vector<8x512xi1>, vector<8x512xi32>
    %c0_i32_6 = arith.constant 0 : i32
    %24 = vector.broadcast %c0_i32_6 : i32 to vector<8x512xi32>
    %25 = arith.cmpi eq, %23, %24 : vector<8x512xi32>
    %c1_i32_7 = arith.constant 1 : i32
    %26 = tpu.dynamic_rotate %4 by %c1_i32_7 dim 0 : vector<8x512xf32>, i32 -> vector<8x512xf32>
    %cst_8 = arith.constant 0.000000e+00 : f32
    %27 = vector.broadcast %cst_8 : f32 to vector<8x512xf32>
    %28 = arith.select %25, %27, %26 : vector<8x512xi1>, vector<8x512xf32>
    %c3_i32 = arith.constant 3 : i32
    %29 = vector.broadcast %c3_i32 : i32 to vector<8x512xi32>
    %30 = arith.cmpi eq, %23, %29 : vector<8x512xi32>
    %c7_i32 = arith.constant 7 : i32
    %31 = tpu.dynamic_rotate %5 by %c7_i32 dim 0 : vector<8x512xf32>, i32 -> vector<8x512xf32>
    %cst_9 = arith.constant 0.000000e+00 : f32
    %32 = vector.broadcast %cst_9 : f32 to vector<8x512xf32>
    %33 = arith.select %30, %32, %31 : vector<8x512xi1>, vector<8x512xf32>
    %34 = arith.addf %3, %28 : vector<8x512xf32>
    %35 = arith.addf %34, %33 : vector<8x512xf32>
    %c0_10 = arith.constant 0 : index
    %c0_11 = arith.constant 0 : index
    %36 = vector.load %arg3[%c0_10, %c0_11] : memref<2x512xf32, #tpu.memory_space<vmem>>, vector<1x512xf32>
    %37 = vector.broadcast %36 : vector<1x512xf32> to vector<8x512xf32>
    %38 = arith.addf %35, %37 : vector<8x512xf32>
    %cst_12 = arith.constant 0.000000e+00 : f32
    %39 = vector.broadcast %cst_12 : f32 to vector<8x512xf32>
    %40 = arith.maximumf %38, %39 : vector<8x512xf32>
    %41 = arith.addf %40, %6 : vector<8x512xf32>
    %c1 = arith.constant 1 : index
    %c0_13 = arith.constant 0 : index
    %42 = vector.load %arg3[%c1, %c0_13] : memref<2x512xf32, #tpu.memory_space<vmem>>, vector<1x512xf32>
    %43 = vector.broadcast %42 : vector<1x512xf32> to vector<8x512xf32>
    %44 = arith.addf %41, %43 : vector<8x512xf32>
    %c0_14 = arith.constant 0 : index
    %c0_15 = arith.constant 0 : index
    %45 = vector.load %arg4[%c0_14, %c0_15] : memref<8x512xf32, #tpu.memory_space<vmem>>, vector<8x512xf32>
    tpu.vector_store %arg4[%c0_14, %c0_15], %44 {strides = array<i32>} : memref<8x512xf32, #tpu.memory_space<vmem>>, vector<8x512xf32>,
    return
  }
  func.func @transform_0(%arg0: i32) -> (i32, i32) {
    %c0_i32 = arith.constant 0 : i32
    %c0_i32_0 = arith.constant 0 : i32
    return %arg0, %c0_i32 : i32, i32
  }
  func.func @transform_1(%arg0: i32) -> (i32, i32) {
    %c0_i32 = arith.constant 0 : i32
    %c0_i32_0 = arith.constant 0 : i32
    %c0_i32_1 = arith.constant 0 : i32
    return %c0_i32, %c0_i32_0 : i32, i32
  }
  func.func @transform_2(%arg0: i32) -> (i32, i32) {
    %c0_i32 = arith.constant 0 : i32
    %c0_i32_0 = arith.constant 0 : i32
    %c0_i32_1 = arith.constant 0 : i32
    return %c0_i32, %c0_i32_0 : i32, i32
  }
  func.func @transform_3(%arg0: i32) -> (i32, i32) {
    %c0_i32 = arith.constant 0 : i32
    %c0_i32_0 = arith.constant 0 : i32
    return %arg0, %c0_i32 : i32, i32
  }
}

</mosaic_0001>

<bundles_post_ra>
// kernel: tpu_custom_call.1
= control target key start
LH: loop header
LB: loop body
LE: loop exit
PB: predicated region body
PF: predicated region fallthrough
CT: control target
= control target key end

     0   :  { %8 = vsyncpa [#allocation3], 0  ;;  %s1963_s0 = inlined_call_operand.hbm [shape: f32[8,256], index: 0, kind: input, shape index: {}]   ;;  %s1964_s1 = inlined_call_operand.hbm [shape: f32[256,2048], index: 1, kind: input, shape index: {}]   ;;  %s1965_s2 = inlined_call_operand.hbm [shape: f32[2,512], index: 2, kind: input, shape index: {}]   ;;  %s1966_s3 = inlined_call_operand.hbm [shape: f32[8,512], index: 3, kind: output, shape index: {}]  }
   0x1   :  { %9 = vsyncpa [#allocation6], 0 }
   0x2   :  { %10 = vsyncpa [#allocation4], 0  ;;  %s1869_s12 = smov [#allocation5]   ;;  %s1775_s16 = scalar_lea.hbm %s1964_s1, 65536 }
   0x3   :  { %s26_s13 = sshll.u32 %s1869_s12, 4  ;;  %p1776_p0 = scmp.ne.s32.totalorder %s1964_s1, %s1775_s16  ;;  %s27_s13 = int_to_ptr.vmem [resolvable:$true] %s26_s13 }
   0x4   :  { %p1779_p1 = scmp.lt.u32.totalorder %s1775_s16, %s1964_s1 }
   0x6   :  { %p1781_p2 = pnand %p1779_p1, %p1776_p0 }
   0x8   :  { %1784 = shalt.err (!%p1781_p2)
}
   0x9   :  { %s1785_s21 = scalar_lea.vmem %s27_s13, 65536  ;;  %p1790_p4 = scmp.lt.s32.totalorder %s27_s13, %s27_s13 }
   0xa   :  { %p1786_p3 = scmp.ne.s32.totalorder %s27_s13, %s1785_s21  ;;  %p1791_p5 = scmp.lt.s32.totalorder %s1785_s21, %s1785_s21 }
   0xc   :  { %p1792_p6 = por %p1791_p5, %p1790_p4 }
   0xe   :  { %p1793_p7 = pnand %p1792_p6, %p1786_p3 }
  0x10   :  { %1796 = shalt.err (!%p1793_p7)
}
  0x11   :  { %s1870_s22 = smov 2048   ;;  %s1871_s23 = smov 128  }
  0x12   :  { %32 = dma.hbm_to_vmem [thread:$0]  %s1964_s1, 65536, %s27_s13, [#allocation6], %s1870_s22, %s1870_s22, %s1871_s23  }
  0x13   :  { %s1872_s26 = smov [#allocation2]   ;;  %s1873_s28 = smov [#allocation7]  }
  0x14   :  { %s17_s27 = sshll.u32 %s1872_s26, 4  ;;  %s39_s29 = sshll.u32 %s1873_s28, 4  ;;  %s18_s27 = int_to_ptr.vmem [resolvable:$true] %s17_s27  ;;  %s40_s29 = int_to_ptr.vmem [resolvable:$true] %s39_s29 }
  0x15   :  { %s1797_s5 = scalar_lea.hbm %s1963_s0, 256 }
  0x16   :  { %p1798_p8 = scmp.ne.s32.totalorder %s1963_s0, %s1797_s5  ;;  %p1801_p9 = scmp.lt.u32.totalorder %s1797_s5, %s1963_s0 }
  0x18   :  { %p1803_p10 = pnand %p1801_p9, %p1798_p8 }
  0x1a   :  { %1806 = shalt.err (!%p1803_p10)
}
  0x1b   :  { %s1807_s1 = scalar_lea.vmem %s18_s27, 256  ;;  %p1812_p12 = scmp.lt.s32.totalorder %s18_s27, %s18_s27 }
  0x1c   :  { %p1808_p11 = scmp.ne.s32.totalorder %s18_s27, %s1807_s1  ;;  %p1813_p13 = scmp.lt.s32.totalorder %s1807_s1, %s1807_s1 }
  0x1e   :  { %p1814_p0 = por %p1813_p13, %p1812_p12 }
  0x20   :  { %p1815_p1 = pnand %p1814_p0, %p1808_p11 }
  0x22   :  { %1818 = shalt.err (!%p1815_p1)
}
  0x23   :  { %20 = dma.hbm_to_vmem [thread:$0]  %s1963_s0, 256, %s18_s27, [#allocation3]  }
  0x24   :  { %s1819_s14 = scalar_lea.hbm %s1965_s2, 128 }
  0x25   :  { %p1820_p2 = scmp.ne.s32.totalorder %s1965_s2, %s1819_s14  ;;  %p1823_p3 = scmp.lt.u32.totalorder %s1819_s14, %s1965_s2 }
  0x27   :  { %p1825_p4 = pnand %p1823_p3, %p1820_p2 }
  0x29   :  { %1828 = shalt.err (!%p1825_p4)
}
  0x2a   :  { %s1829_s19 = scalar_lea.vmem %s40_s29, 128  ;;  %p1834_p6 = scmp.lt.s32.totalorder %s40_s29, %s40_s29 }
  0x2b   :  { %p1830_p5 = scmp.ne.s32.totalorder %s40_s29, %s1829_s19  ;;  %p1835_p7 = scmp.lt.s32.totalorder %s1829_s19, %s1829_s19 }
  0x2d   :  { %p1836_p8 = por %p1835_p7, %p1834_p6 }
  0x2f   :  { %p1837_p9 = pnand %p1836_p8, %p1830_p5 }
  0x31   :  { %1840 = shalt.err (!%p1837_p9)
}
  0x32   :  { %42 = dma.hbm_to_vmem [thread:$0]  %s1965_s2, 128, %s40_s29, [#allocation6]  }
  0x33   :  { %1863 = dma.done.wait [#allocation3], 256  }
  0x34   :  { %1864 = vsyncadd [#allocation3], 4294967040 }
  0x35   :  { %1865 = dma.done.wait [#allocation6], 65664  }
  0x36   :  { %1866 = vsyncadd [#allocation6], 4294901632  ;;  %v55_v0 = vld [vmem:[#allocation5 + $0x8] sm:$0xff]  ;;  %v57_v2 = vld [vmem:[#allocation5 + $0x18] sm:$0xff]  ;;  %s1874_s2 = smov [#allocation8]  }
  0x37   :  { %v71_v1 = vld [vmem:[#allocation5 + $0x88] sm:$0xff]  ;;  %v73_v4 = vld [vmem:[#allocation5 + $0x98] sm:$0xff]  ;;  %v54_v5 = vld [vmem:[#allocation5] sm:$0xff]  ;;  %s1245_s21 = sshll.u32 %s1874_s2, 4  ;;  %s1246_s21 = int_to_ptr.vmem [resolvable:$true] %s1245_s21 }
  0x38   :  { %v1255_v3 = vpack.c.bf16 %v71_v1, %v55_v0  ;;  %v70_v6 = vld [vmem:[#allocation5 + $0x80] sm:$0xff]  ;;  %v1319_v7 = vpack.c.bf16 %v73_v4, %v57_v2  ;;  %v56_v9 = vld [vmem:[#allocation5 + $0x10] sm:$0xff]  ;;  %v87_v11 = vld [vmem:[#allocation5 + $0x108] sm:$0xff]  ;;  %s1841_s22 = scalar_lea.vmem %s1246_s21, 512  ;;  %p1846_p11 = scmp.lt.s32.totalorder %s1246_s21, %s1246_s21 }
  0x39   :  { %v1257_v8 = vpack.c.bf16 %v70_v6, %v54_v5  ;;  %v72_v10 = vld [vmem:[#allocation5 + $0x90] sm:$0xff]  ;;  %v103_v13 = vld [vmem:[#allocation5 + $0x188] sm:$0xff]  ;;  %v89_v14 = vld [vmem:[#allocation5 + $0x118] sm:$0xff]  ;;  %p1842_p10 = scmp.ne.s32.totalorder %s1246_s21, %s1841_s22  ;;  %p1847_p12 = scmp.lt.s32.totalorder %s1841_s22, %s1841_s22 }
  0x3a   :  { %1256 = vmatprep.subr.bf16.mxu0 %v1255_v3  ;;  %v1321_v12 = vpack.c.bf16 %v72_v10, %v56_v9  ;;  %v105_v15 = vld [vmem:[#allocation5 + $0x198] sm:$0xff]  ;;  %1320 = vmatprep.subr.bf16.mxu1 %v1319_v7  ;;  %v1259_v16 = vpack.c.bf16 %v103_v13, %v87_v11  ;;  %v86_v18 = vld [vmem:[#allocation5 + $0x100] sm:$0xff]  ;;  %v88_v20 = vld [vmem:[#allocation5 + $0x110] sm:$0xff] }
  0x3b   :  { %1258 = vmatpush1.bf16.msra.mxu0 %v1257_v8  ;;  %v1323_v17 = vpack.c.bf16 %v105_v15, %v89_v14  ;;  %v102_v19 = vld [vmem:[#allocation5 + $0x180] sm:$0xff]  ;;  %v104_v22 = vld [vmem:[#allocation5 + $0x190] sm:$0xff]  ;;  %v119_v23 = vld [vmem:[#allocation5 + $0x208] sm:$0xff]  ;;  %p1848_p13 = por %p1847_p12, %p1846_p11 }
  0x3c   :  { %1322 = vmatpush1.bf16.msra.mxu1 %v1321_v12  ;;  %v1261_v21 = vpack.c.bf16 %v102_v19, %v86_v18  ;;  %v135_v24 = vld [vmem:[#allocation5 + $0x288] sm:$0xff]  ;;  %1260 = vmatprep.subr.bf16.mxu0 %v1259_v16  ;;  %v1325_v25 = vpack.c.bf16 %v104_v22, %v88_v20  ;;  %v121_v27 = vld [vmem:[#allocation5 + $0x218] sm:$0xff]  ;;  %v118_v29 = vld [vmem:[#allocation5 + $0x200] sm:$0xff] }
  0x3d   :  { %1324 = vmatprep.subr.bf16.mxu1 %v1323_v17  ;;  %v1263_v26 = vpack.c.bf16 %v135_v24, %v119_v23  ;;  %v137_v28 = vld [vmem:[#allocation5 + $0x298] sm:$0xff]  ;;  %v134_v31 = vld [vmem:[#allocation5 + $0x280] sm:$0xff]  ;;  %v120_v32 = vld [vmem:[#allocation5 + $0x210] sm:$0xff]  ;;  %p1849_p0 = pnand %p1848_p13, %p1842_p10 }
  0x3e   :  { %v1327_v30 = vpack.c.bf16 %v137_v28, %v121_v27  ;;  %v136_v33 = vld [vmem:[#allocation5 + $0x290] sm:$0xff]  ;;  %v1265_v34 = vpack.c.bf16 %v134_v31, %v118_v29  ;;  %v151_v35 = vld [vmem:[#allocation5 + $0x308] sm:$0xff]  ;;  %v153_v37 = vld [vmem:[#allocation5 + $0x318] sm:$0xff] }
  0x3f   :  { %1262 = vmatpush1.bf16.msra.mxu0 %v1261_v21  ;;  %v167_v36 = vld [vmem:[#allocation5 + $0x388] sm:$0xff]  ;;  %v1329_v38 = vpack.c.bf16 %v136_v33, %v120_v32  ;;  %v169_v40 = vld [vmem:[#allocation5 + $0x398] sm:$0xff]  ;;  %v150_v41 = vld [vmem:[#allocation5 + $0x300] sm:$0xff] }
  0x40   :  { %1326 = vmatpush1.bf16.msra.mxu1 %v1325_v25  ;;  %1264 = vmatprep.subr.bf16.mxu0 %v1263_v26  ;;  %v1267_v39 = vpack.c.bf16 %v167_v36, %v151_v35  ;;  %v166_v42 = vld [vmem:[#allocation5 + $0x380] sm:$0xff]  ;;  %v1331_v43 = vpack.c.bf16 %v169_v40, %v153_v37  ;;  %v152_v44 = vld [vmem:[#allocation5 + $0x310] sm:$0xff]  ;;  %v183_v46 = vld [vmem:[#allocation5 + $0x408] sm:$0xff] }
  0x41   :  { %1328 = vmatprep.subr.bf16.mxu1 %v1327_v30  ;;  %v168_v45 = vld [vmem:[#allocation5 + $0x390] sm:$0xff]  ;;  %v199_v47 = vld [vmem:[#allocation5 + $0x488] sm:$0xff]  ;;  %v185_v48 = vld [vmem:[#allocation5 + $0x418] sm:$0xff]  ;;  %v1269_v50 = vpack.c.bf16 %v166_v42, %v150_v41 }
  0x42   :  { %v201_v49 = vld [vmem:[#allocation5 + $0x498] sm:$0xff]  ;;  %v1333_v51 = vpack.c.bf16 %v168_v45, %v152_v44  ;;  %v1271_v52 = vpack.c.bf16 %v199_v47, %v183_v46  ;;  %v182_v53 = vld [vmem:[#allocation5 + $0x400] sm:$0xff]  ;;  %v184_v55 = vld [vmem:[#allocation5 + $0x410] sm:$0xff] }
  0x43   :  { %1266 = vmatpush1.bf16.msra.mxu0 %v1265_v34  ;;  %v198_v54 = vld [vmem:[#allocation5 + $0x480] sm:$0xff]  ;;  %v1335_v56 = vpack.c.bf16 %v201_v49, %v185_v48  ;;  %v200_v57 = vld [vmem:[#allocation5 + $0x490] sm:$0xff]  ;;  %v215_v58 = vld [vmem:[#allocation5 + $0x508] sm:$0xff] }
  0x44   :  { %1330 = vmatpush1.bf16.msra.mxu1 %v1329_v38  ;;  %1268 = vmatprep.subr.bf16.mxu0 %v1267_v39  ;;  %v231_v59 = vld [vmem:[#allocation5 + $0x588] sm:$0xff]  ;;  %v217_v60 = vld [vmem:[#allocation5 + $0x518] sm:$0xff]  ;;  %v1273_v62 = vpack.c.bf16 %v198_v54, %v182_v53  ;;  %v1337_v63 = vpack.c.bf16 %v200_v57, %v184_v55  ;;  %v214_v1 = vld [vmem:[#allocation5 + $0x500] sm:$0xff] }
  0x45   :  { %1332 = vmatprep.subr.bf16.mxu1 %v1331_v43  ;;  %v233_v61 = vld [vmem:[#allocation5 + $0x598] sm:$0xff]  ;;  %v1275_v0 = vpack.c.bf16 %v231_v59, %v215_v58  ;;  %v230_v2 = vld [vmem:[#allocation5 + $0x580] sm:$0xff]  ;;  %v216_v3 = vld [vmem:[#allocation5 + $0x510] sm:$0xff] }
  0x46   :  { %v1339_v4 = vpack.c.bf16 %v233_v61, %v217_v60  ;;  %v232_v5 = vld [vmem:[#allocation5 + $0x590] sm:$0xff]  ;;  %v247_v6 = vld [vmem:[#allocation5 + $0x608] sm:$0xff]  ;;  %v249_v8 = vld [vmem:[#allocation5 + $0x618] sm:$0xff]  ;;  %v1277_v10 = vpack.c.bf16 %v230_v2, %v214_v1 }
  0x47   :  { %1270 = vmatpush1.bf16.msra.mxu0 %v1269_v50  ;;  %v263_v7 = vld [vmem:[#allocation5 + $0x688] sm:$0xff]  ;;  %v265_v9 = vld [vmem:[#allocation5 + $0x698] sm:$0xff]  ;;  %v1341_v11 = vpack.c.bf16 %v232_v5, %v216_v3  ;;  %v246_v13 = vld [vmem:[#allocation5 + $0x600] sm:$0xff] }
  0x48   :  { %1334 = vmatpush1.bf16.msra.mxu1 %v1333_v51  ;;  %1272 = vmatprep.subr.bf16.mxu0 %v1271_v52  ;;  %v1279_v12 = vpack.c.bf16 %v263_v7, %v247_v6  ;;  %v262_v14 = vld [vmem:[#allocation5 + $0x680] sm:$0xff]  ;;  %v248_v15 = vld [vmem:[#allocation5 + $0x610] sm:$0xff]  ;;  %v1343_v16 = vpack.c.bf16 %v265_v9, %v249_v8  ;;  %v279_v18 = vld [vmem:[#allocation5 + $0x708] sm:$0xff] }
  0x49   :  { %1336 = vmatprep.subr.bf16.mxu1 %v1335_v56  ;;  %v264_v17 = vld [vmem:[#allocation5 + $0x690] sm:$0xff]  ;;  %v295_v19 = vld [vmem:[#allocation5 + $0x788] sm:$0xff]  ;;  %v281_v20 = vld [vmem:[#allocation5 + $0x718] sm:$0xff]  ;;  %v1281_v22 = vpack.c.bf16 %v262_v14, %v246_v13 }
  0x4a   :  { %v297_v21 = vld [vmem:[#allocation5 + $0x798] sm:$0xff]  ;;  %v1345_v23 = vpack.c.bf16 %v264_v17, %v248_v15  ;;  %v1283_v24 = vpack.c.bf16 %v295_v19, %v279_v18  ;;  %v278_v25 = vld [vmem:[#allocation5 + $0x700] sm:$0xff]  ;;  %v280_v27 = vld [vmem:[#allocation5 + $0x710] sm:$0xff] }
  0x4b   :  { %1274 = vmatpush1.bf16.msra.mxu0 %v1273_v62  ;;  %v294_v26 = vld [vmem:[#allocation5 + $0x780] sm:$0xff]  ;;  %v1347_v28 = vpack.c.bf16 %v297_v21, %v281_v20  ;;  %v296_v29 = vld [vmem:[#allocation5 + $0x790] sm:$0xff]  ;;  %v311_v30 = vld [vmem:[#allocation5 + $0x808] sm:$0xff] }
  0x4c   :  { %1338 = vmatpush1.bf16.msra.mxu1 %v1337_v63  ;;  %1276 = vmatprep.subr.bf16.mxu0 %v1275_v0  ;;  %v327_v31 = vld [vmem:[#allocation5 + $0x888] sm:$0xff]  ;;  %v313_v32 = vld [vmem:[#allocation5 + $0x818] sm:$0xff]  ;;  %v1285_v34 = vpack.c.bf16 %v294_v26, %v278_v25  ;;  %v1349_v35 = vpack.c.bf16 %v296_v29, %v280_v27  ;;  %v310_v37 = vld [vmem:[#allocation5 + $0x800] sm:$0xff] }
  0x4d   :  { %1340 = vmatprep.subr.bf16.mxu1 %v1339_v4  ;;  %v329_v33 = vld [vmem:[#allocation5 + $0x898] sm:$0xff]  ;;  %v1287_v36 = vpack.c.bf16 %v327_v31, %v311_v30  ;;  %v326_v38 = vld [vmem:[#allocation5 + $0x880] sm:$0xff]  ;;  %v312_v39 = vld [vmem:[#allocation5 + $0x810] sm:$0xff] }
  0x4e   :  { %v1351_v40 = vpack.c.bf16 %v329_v33, %v313_v32  ;;  %v328_v41 = vld [vmem:[#allocation5 + $0x890] sm:$0xff]  ;;  %v343_v42 = vld [vmem:[#allocation5 + $0x908] sm:$0xff]  ;;  %v345_v44 = vld [vmem:[#allocation5 + $0x918] sm:$0xff]  ;;  %v1289_v46 = vpack.c.bf16 %v326_v38, %v310_v37 }
  0x4f   :  { %1278 = vmatpush1.bf16.msra.mxu0 %v1277_v10  ;;  %v359_v43 = vld [vmem:[#allocation5 + $0x988] sm:$0xff]  ;;  %v361_v45 = vld [vmem:[#allocation5 + $0x998] sm:$0xff]  ;;  %v1353_v47 = vpack.c.bf16 %v328_v41, %v312_v39  ;;  %v342_v49 = vld [vmem:[#allocation5 + $0x900] sm:$0xff] }
  0x50   :  { %1342 = vmatpush1.bf16.msra.mxu1 %v1341_v11  ;;  %1280 = vmatprep.subr.bf16.mxu0 %v1279_v12  ;;  %v1291_v48 = vpack.c.bf16 %v359_v43, %v343_v42  ;;  %v358_v50 = vld [vmem:[#allocation5 + $0x980] sm:$0xff]  ;;  %v344_v51 = vld [vmem:[#allocation5 + $0x910] sm:$0xff]  ;;  %v1355_v52 = vpack.c.bf16 %v361_v45, %v345_v44  ;;  %v375_v54 = vld [vmem:[#allocation5 + $0xa08] sm:$0xff] }
  0x51   :  { %1344 = vmatprep.subr.bf16.mxu1 %v1343_v16  ;;  %v360_v53 = vld [vmem:[#allocation5 + $0x990] sm:$0xff]  ;;  %v391_v55 = vld [vmem:[#allocation5 + $0xa88] sm:$0xff]  ;;  %v377_v56 = vld [vmem:[#allocation5 + $0xa18] sm:$0xff]  ;;  %v1293_v58 = vpack.c.bf16 %v358_v50, %v342_v49 }
  0x52   :  { %v393_v57 = vld [vmem:[#allocation5 + $0xa98] sm:$0xff]  ;;  %v1357_v59 = vpack.c.bf16 %v360_v53, %v344_v51  ;;  %v1295_v60 = vpack.c.bf16 %v391_v55, %v375_v54  ;;  %v374_v61 = vld [vmem:[#allocation5 + $0xa00] sm:$0xff]  ;;  %v376_v63 = vld [vmem:[#allocation5 + $0xa10] sm:$0xff] }
  0x53   :  { %1282 = vmatpush1.bf16.msra.mxu0 %v1281_v22  ;;  %v390_v62 = vld [vmem:[#allocation5 + $0xa80] sm:$0xff]  ;;  %v1359_v0 = vpack.c.bf16 %v393_v57, %v377_v56  ;;  %v392_v1 = vld [vmem:[#allocation5 + $0xa90] sm:$0xff]  ;;  %v407_v2 = vld [vmem:[#allocation5 + $0xb08] sm:$0xff] }
  0x54   :  { %1346 = vmatpush1.bf16.msra.mxu1 %v1345_v23  ;;  %1284 = vmatprep.subr.bf16.mxu0 %v1283_v24  ;;  %v423_v3 = vld [vmem:[#allocation5 + $0xb88] sm:$0xff]  ;;  %v409_v4 = vld [vmem:[#allocation5 + $0xb18] sm:$0xff]  ;;  %v1297_v6 = vpack.c.bf16 %v390_v62, %v374_v61  ;;  %v406_v7 = vld [vmem:[#allocation5 + $0xb00] sm:$0xff]  ;;  %v1361_v8 = vpack.c.bf16 %v392_v1, %v376_v63 }
  0x55   :  { %1348 = vmatprep.subr.bf16.mxu1 %v1347_v28  ;;  %v425_v5 = vld [vmem:[#allocation5 + $0xb98] sm:$0xff]  ;;  %v1299_v9 = vpack.c.bf16 %v423_v3, %v407_v2  ;;  %v422_v10 = vld [vmem:[#allocation5 + $0xb80] sm:$0xff]  ;;  %v408_v11 = vld [vmem:[#allocation5 + $0xb10] sm:$0xff] }
  0x56   :  { %v424_v12 = vld [vmem:[#allocation5 + $0xb90] sm:$0xff]  ;;  %v1363_v13 = vpack.c.bf16 %v425_v5, %v409_v4  ;;  %v439_v14 = vld [vmem:[#allocation5 + $0xc08] sm:$0xff]  ;;  %v1931_v16 = vld [vmem:[#allocation2 + $0x8] sm:$0xff]  ;;  %v1301_v19 = vpack.c.bf16 %v422_v10, %v406_v7 }
  0x57   :  { %1286 = vmatpush1.bf16.msra.mxu0 %v1285_v34  ;;  %v455_v15 = vld [vmem:[#allocation5 + $0xc88] sm:$0xff]  ;;  %v441_v17 = vld [vmem:[#allocation5 + $0xc18] sm:$0xff]  ;;  %630 = vmatprep.mubr.f32.mxu0 %v1931_v16  ;;  %v1365_v20 = vpack.c.bf16 %v424_v12, %v408_v11  ;;  %v438_v22 = vld [vmem:[#allocation5 + $0xc00] sm:$0xff] }
  0x58   :  { %1350 = vmatpush1.bf16.msra.mxu1 %v1349_v35  ;;  %1288 = vmatprep.subr.bf16.mxu0 %v1287_v36  ;;  %v457_v18 = vld [vmem:[#allocation5 + $0xc98] sm:$0xff]  ;;  %v1303_v21 = vpack.c.bf16 %v455_v15, %v439_v14  ;;  %v454_v23 = vld [vmem:[#allocation5 + $0xc80] sm:$0xff]  ;;  %v440_v24 = vld [vmem:[#allocation5 + $0xc10] sm:$0xff] }
  0x59   :  { %1352 = vmatprep.subr.bf16.mxu1 %v1351_v40  ;;  %701 = vmatprep.mubr.f32.mxu1 %v1931_v16  ;;  %v1367_v25 = vpack.c.bf16 %v457_v18, %v441_v17  ;;  %v456_v26 = vld [vmem:[#allocation5 + $0xc90] sm:$0xff]  ;;  %v471_v27 = vld [vmem:[#allocation5 + $0xd08] sm:$0xff]  ;;  %v473_v29 = vld [vmem:[#allocation5 + $0xd18] sm:$0xff]  ;;  %v1305_v31 = vpack.c.bf16 %v454_v23, %v438_v22 }
  0x5a   :  { %v487_v28 = vld [vmem:[#allocation5 + $0xd88] sm:$0xff]  ;;  %v489_v30 = vld [vmem:[#allocation5 + $0xd98] sm:$0xff]  ;;  %v1369_v32 = vpack.c.bf16 %v456_v26, %v440_v24  ;;  %v470_v34 = vld [vmem:[#allocation5 + $0xd00] sm:$0xff] }
  0x5b   :  { %1290 = vmatpush1.bf16.msra.mxu0 %v1289_v46  ;;  %v1307_v33 = vpack.c.bf16 %v487_v28, %v471_v27  ;;  %v486_v35 = vld [vmem:[#allocation5 + $0xd80] sm:$0xff]  ;;  %v472_v36 = vld [vmem:[#allocation5 + $0xd10] sm:$0xff]  ;;  %v1371_v37 = vpack.c.bf16 %v489_v30, %v473_v29  ;;  %v503_v39 = vld [vmem:[#allocation5 + $0xe08] sm:$0xff] }
  0x5c   :  { %1354 = vmatpush1.bf16.msra.mxu1 %v1353_v47  ;;  %1292 = vmatprep.subr.bf16.mxu0 %v1291_v48  ;;  %v488_v38 = vld [vmem:[#allocation5 + $0xd90] sm:$0xff]  ;;  %v519_v40 = vld [vmem:[#allocation5 + $0xe88] sm:$0xff]  ;;  %v505_v41 = vld [vmem:[#allocation5 + $0xe18] sm:$0xff]  ;;  %v1309_v43 = vpack.c.bf16 %v486_v35, %v470_v34 }
  0x5d   :  { %1356 = vmatprep.subr.bf16.mxu1 %v1355_v52  ;;  %v521_v42 = vld [vmem:[#allocation5 + $0xe98] sm:$0xff]  ;;  %v1373_v44 = vpack.c.bf16 %v488_v38, %v472_v36  ;;  %v1311_v45 = vpack.c.bf16 %v519_v40, %v503_v39  ;;  %v502_v46 = vld [vmem:[#allocation5 + $0xe00] sm:$0xff]  ;;  %v504_v48 = vld [vmem:[#allocation5 + $0xe10] sm:$0xff] }
  0x5e   :  { %v518_v47 = vld [vmem:[#allocation5 + $0xe80] sm:$0xff]  ;;  %v1375_v49 = vpack.c.bf16 %v521_v42, %v505_v41  ;;  %v520_v50 = vld [vmem:[#allocation5 + $0xe90] sm:$0xff]  ;;  %v535_v51 = vld [vmem:[#allocation5 + $0xf08] sm:$0xff] }
  0x5f   :  { %1294 = vmatpush1.bf16.msra.mxu0 %v1293_v58  ;;  %v551_v52 = vld [vmem:[#allocation5 + $0xf88] sm:$0xff]  ;;  %v537_v53 = vld [vmem:[#allocation5 + $0xf18] sm:$0xff]  ;;  %v1313_v55 = vpack.c.bf16 %v518_v47, %v502_v46  ;;  %v1377_v56 = vpack.c.bf16 %v520_v50, %v504_v48  ;;  %v534_v58 = vld [vmem:[#allocation5 + $0xf00] sm:$0xff] }
  0x60   :  { %1358 = vmatpush1.bf16.msra.mxu1 %v1357_v59  ;;  %1296 = vmatprep.subr.bf16.mxu0 %v1295_v60  ;;  %v553_v54 = vld [vmem:[#allocation5 + $0xf98] sm:$0xff]  ;;  %v1315_v57 = vpack.c.bf16 %v551_v52, %v535_v51  ;;  %v550_v59 = vld [vmem:[#allocation5 + $0xf80] sm:$0xff]  ;;  %v536_v60 = vld [vmem:[#allocation5 + $0xf10] sm:$0xff] }
  0x61   :  { %1360 = vmatprep.subr.bf16.mxu1 %v1359_v0  ;;  %v1379_v61 = vpack.c.bf16 %v553_v54, %v537_v53  ;;  %v552_v62 = vld [vmem:[#allocation5 + $0xf90] sm:$0xff]  ;;  %v59_v63 = vld [vmem:[#allocation5 + $0x28] sm:$0xff]  ;;  %v61_v1 = vld [vmem:[#allocation5 + $0x38] sm:$0xff]  ;;  %v1317_v3 = vpack.c.bf16 %v550_v59, %v534_v58 }
  0x62   :  { %v75_v0 = vld [vmem:[#allocation5 + $0xa8] sm:$0xff]  ;;  %v77_v2 = vld [vmem:[#allocation5 + $0xb8] sm:$0xff]  ;;  %v1381_v4 = vpack.c.bf16 %v552_v62, %v536_v60  ;;  %v74_v7 = vld [vmem:[#allocation5 + $0xa0] sm:$0xff] }
  0x63   :  { %1298 = vmatpush1.bf16.msra.mxu0 %v1297_v6  ;;  %v1383_v5 = vpack.c.bf16 %v75_v0, %v59_v63  ;;  %v58_v6 = vld [vmem:[#allocation5 + $0x20] sm:$0xff]  ;;  %v76_v10 = vld [vmem:[#allocation5 + $0xb0] sm:$0xff]  ;;  %v91_v11 = vld [vmem:[#allocation5 + $0x128] sm:$0xff] }
  0x64   :  { %1362 = vmatpush1.bf16.msra.mxu1 %v1361_v8  ;;  %1300 = vmatprep.subr.bf16.mxu0 %v1299_v9  ;;  %v60_v8 = vld [vmem:[#allocation5 + $0x30] sm:$0xff]  ;;  %v1447_v9 = vpack.c.bf16 %v77_v2, %v61_v1  ;;  %v107_v12 = vld [vmem:[#allocation5 + $0x1a8] sm:$0xff]  ;;  %v109_v14 = vld [vmem:[#allocation5 + $0x1b8] sm:$0xff]  ;;  %v1385_v17 = vpack.c.bf16 %v74_v7, %v58_v6 }
  0x65   :  { %1364 = vmatprep.subr.bf16.mxu1 %v1363_v13  ;;  %v93_v13 = vld [vmem:[#allocation5 + $0x138] sm:$0xff]  ;;  %v1935_v15 = vld [vmem:[#allocation2] sm:$0xff]  ;;  %v1449_v18 = vpack.c.bf16 %v76_v10, %v60_v8  ;;  %v139_v26 = vld [vmem:[#allocation5 + $0x2a8] sm:$0xff] }
  0x66   :  { %v92_v22 = vld [vmem:[#allocation5 + $0x130] sm:$0xff]  ;;  %v1451_v23 = vpack.c.bf16 %v109_v14, %v93_v13  ;;  %v125_v27 = vld [vmem:[#allocation5 + $0x238] sm:$0xff]  ;;  %v171_v38 = vld [vmem:[#allocation5 + $0x3a8] sm:$0xff] }
  0x67   :  { %1302 = vmatpush1.bf16.msra.mxu0 %v1301_v19  ;;  %v1387_v19 = vpack.c.bf16 %v107_v12, %v91_v11  ;;  %v108_v24 = vld [vmem:[#allocation5 + $0x1b0] sm:$0xff]  ;;  %v141_v28 = vld [vmem:[#allocation5 + $0x2b8] sm:$0xff]  ;;  %v203_v50 = vld [vmem:[#allocation5 + $0x4a8] sm:$0xff] }
  0x68   :  { %1366 = vmatpush1.bf16.msra.mxu1 %v1365_v20  ;;  %1304 = vmatprep.subr.bf16.mxu0 %v1303_v21  ;;  %v90_v20 = vld [vmem:[#allocation5 + $0x120] sm:$0xff]  ;;  %v1453_v30 = vpack.c.bf16 %v108_v24, %v92_v22  ;;  %v124_v34 = vld [vmem:[#allocation5 + $0x230] sm:$0xff]  ;;  %v1455_v35 = vpack.c.bf16 %v141_v28, %v125_v27  ;;  %v157_v39 = vld [vmem:[#allocation5 + $0x338] sm:$0xff] }
  0x69   :  { %1368 = vmatprep.subr.bf16.mxu1 %v1367_v25  ;;  %v106_v21 = vld [vmem:[#allocation5 + $0x1a0] sm:$0xff]  ;;  %v123_v25 = vld [vmem:[#allocation5 + $0x228] sm:$0xff]  ;;  %v140_v36 = vld [vmem:[#allocation5 + $0x2b0] sm:$0xff] }
  0x6a   :  { %v1389_v29 = vpack.c.bf16 %v106_v21, %v90_v20  ;;  %v173_v40 = vld [vmem:[#allocation5 + $0x3b8] sm:$0xff]  ;;  %v1457_v42 = vpack.c.bf16 %v140_v36, %v124_v34  ;;  %v156_v46 = vld [vmem:[#allocation5 + $0x330] sm:$0xff]  ;;  %v235_v62 = vld [vmem:[#allocation5 + $0x5a8] sm:$0xff] }
  0x6b   :  { %1306 = vmatpush1.bf16.msra.mxu0 %v1305_v31  ;;  %v1391_v31 = vpack.c.bf16 %v139_v26, %v123_v25  ;;  %v1459_v47 = vpack.c.bf16 %v173_v40, %v157_v39  ;;  %v172_v48 = vld [vmem:[#allocation5 + $0x3b0] sm:$0xff]  ;;  %v189_v51 = vld [vmem:[#allocation5 + $0x438] sm:$0xff]  ;;  %v267_v10 = vld [vmem:[#allocation5 + $0x6a8] sm:$0xff] }
  0x6c   :  { %1370 = vmatpush1.bf16.msra.mxu1 %v1369_v32  ;;  %1308 = vmatprep.subr.bf16.mxu0 %v1307_v33  ;;  %v122_v32 = vld [vmem:[#allocation5 + $0x220] sm:$0xff]  ;;  %v205_v52 = vld [vmem:[#allocation5 + $0x4b8] sm:$0xff]  ;;  %v1461_v54 = vpack.c.bf16 %v172_v48, %v156_v46  ;;  %v188_v58 = vld [vmem:[#allocation5 + $0x430] sm:$0xff] }
  0x6d   :  { %1372 = vmatprep.subr.bf16.mxu1 %v1371_v37  ;;  %v138_v33 = vld [vmem:[#allocation5 + $0x2a0] sm:$0xff]  ;;  %v155_v37 = vld [vmem:[#allocation5 + $0x328] sm:$0xff]  ;;  %v1463_v59 = vpack.c.bf16 %v205_v52, %v189_v51  ;;  %v204_v60 = vld [vmem:[#allocation5 + $0x4b0] sm:$0xff] }
  0x6e   :  { %v1393_v41 = vpack.c.bf16 %v138_v33, %v122_v32  ;;  %v221_v63 = vld [vmem:[#allocation5 + $0x538] sm:$0xff]  ;;  %v1465_v2 = vpack.c.bf16 %v204_v60, %v188_v58  ;;  %v220_v6 = vld [vmem:[#allocation5 + $0x530] sm:$0xff]  ;;  %v299_v24 = vld [vmem:[#allocation5 + $0x7a8] sm:$0xff] }
  0x6f   :  { %1310 = vmatpush1.bf16.msra.mxu0 %v1309_v43  ;;  %v1395_v43 = vpack.c.bf16 %v171_v38, %v155_v37  ;;  %v237_v0 = vld [vmem:[#allocation5 + $0x5b8] sm:$0xff]  ;;  %v236_v8 = vld [vmem:[#allocation5 + $0x5b0] sm:$0xff]  ;;  %v331_v36 = vld [vmem:[#allocation5 + $0x8a8] sm:$0xff] }
  0x70   :  { %1374 = vmatpush1.bf16.msra.mxu1 %v1373_v44  ;;  %1312 = vmatprep.subr.bf16.mxu0 %v1311_v45  ;;  %v154_v44 = vld [vmem:[#allocation5 + $0x320] sm:$0xff]  ;;  %v1467_v7 = vpack.c.bf16 %v237_v0, %v221_v63  ;;  %v253_v11 = vld [vmem:[#allocation5 + $0x638] sm:$0xff]  ;;  %v1469_v14 = vpack.c.bf16 %v236_v8, %v220_v6  ;;  %v252_v20 = vld [vmem:[#allocation5 + $0x630] sm:$0xff] }
  0x71   :  { %1376 = vmatprep.subr.bf16.mxu1 %v1375_v49  ;;  %v170_v45 = vld [vmem:[#allocation5 + $0x3a0] sm:$0xff]  ;;  %v187_v49 = vld [vmem:[#allocation5 + $0x428] sm:$0xff]  ;;  %v269_v12 = vld [vmem:[#allocation5 + $0x6b8] sm:$0xff] }
  0x72   :  { %v1397_v53 = vpack.c.bf16 %v170_v45, %v154_v44  ;;  %v1471_v21 = vpack.c.bf16 %v269_v12, %v253_v11  ;;  %v268_v22 = vld [vmem:[#allocation5 + $0x6b0] sm:$0xff]  ;;  %v285_v25 = vld [vmem:[#allocation5 + $0x738] sm:$0xff]  ;;  %v363_v48 = vld [vmem:[#allocation5 + $0x9a8] sm:$0xff] }
  0x73   :  { %1314 = vmatpush1.bf16.msra.mxu0 %v1313_v55  ;;  %v1399_v55 = vpack.c.bf16 %v203_v50, %v187_v49  ;;  %v301_v26 = vld [vmem:[#allocation5 + $0x7b8] sm:$0xff]  ;;  %v1473_v28 = vpack.c.bf16 %v268_v22, %v252_v20  ;;  %v284_v32 = vld [vmem:[#allocation5 + $0x730] sm:$0xff]  ;;  %v395_v60 = vld [vmem:[#allocation5 + $0xaa8] sm:$0xff] }
  0x74   :  { %1378 = vmatpush1.bf16.msra.mxu1 %v1377_v56  ;;  %1316 = vmatprep.subr.bf16.mxu0 %v1315_v57  ;;  %v186_v56 = vld [vmem:[#allocation5 + $0x420] sm:$0xff]  ;;  %v1475_v33 = vpack.c.bf16 %v301_v26, %v285_v25  ;;  %v300_v34 = vld [vmem:[#allocation5 + $0x7b0] sm:$0xff]  ;;  %v317_v37 = vld [vmem:[#allocation5 + $0x838] sm:$0xff] }
  0x75   :  { %1380 = vmatprep.subr.bf16.mxu1 %v1379_v61  ;;  %v202_v57 = vld [vmem:[#allocation5 + $0x4a0] sm:$0xff]  ;;  %v219_v61 = vld [vmem:[#allocation5 + $0x528] sm:$0xff]  ;;  %v333_v38 = vld [vmem:[#allocation5 + $0x8b8] sm:$0xff]  ;;  %v1477_v40 = vpack.c.bf16 %v300_v34, %v284_v32 }
  0x76   :  { %v1401_v1 = vpack.c.bf16 %v202_v57, %v186_v56  ;;  %v316_v44 = vld [vmem:[#allocation5 + $0x830] sm:$0xff]  ;;  %v1479_v45 = vpack.c.bf16 %v333_v38, %v317_v37  ;;  %v349_v49 = vld [vmem:[#allocation5 + $0x938] sm:$0xff]  ;;  %v427_v8 = vld [vmem:[#allocation5 + $0xba8] sm:$0xff] }
  0x77   :  { %1318 = vmatpush1.bf16.msra.mxu0 %v1317_v3  ;;  %v1403_v3 = vpack.c.bf16 %v235_v62, %v219_v61  ;;  %v332_v46 = vld [vmem:[#allocation5 + $0x8b0] sm:$0xff]  ;;  %v365_v50 = vld [vmem:[#allocation5 + $0x9b8] sm:$0xff]  ;;  %v459_v22 = vld [vmem:[#allocation5 + $0xca8] sm:$0xff] }
  0x78   :  { %1382 = vmatpush1.bf16.msra.mxu1 %v1381_v4  ;;  %1384 = vmatprep.subr.bf16.mxu0 %v1383_v5  ;;  %v218_v4 = vld [vmem:[#allocation5 + $0x520] sm:$0xff]  ;;  %v1481_v52 = vpack.c.bf16 %v332_v46, %v316_v44  ;;  %v348_v56 = vld [vmem:[#allocation5 + $0x930] sm:$0xff]  ;;  %v1483_v57 = vpack.c.bf16 %v365_v50, %v349_v49  ;;  %v381_v61 = vld [vmem:[#allocation5 + $0xa38] sm:$0xff] }
  0x79   :  { %1448 = vmatprep.subr.bf16.mxu1 %v1447_v9  ;;  %v234_v5 = vld [vmem:[#allocation5 + $0x5a0] sm:$0xff]  ;;  %v251_v9 = vld [vmem:[#allocation5 + $0x628] sm:$0xff]  ;;  %v364_v58 = vld [vmem:[#allocation5 + $0x9b0] sm:$0xff] }
  0x7a   :  { %631 = vmatmul.mubr.f32.vlgmr.msra.gmra.mrb[0].mxu0 %v1935_v15  ;;  %v1405_v13 = vpack.c.bf16 %v234_v5, %v218_v4  ;;  %v397_v62 = vld [vmem:[#allocation5 + $0xab8] sm:$0xff]  ;;  %v1485_v0 = vpack.c.bf16 %v364_v58, %v348_v56  ;;  %v380_v4 = vld [vmem:[#allocation5 + $0xa30] sm:$0xff]  ;;  %v491_v34 = vld [vmem:[#allocation5 + $0xda8] sm:$0xff] }
  0x7b   :  { %702 = vmatmul.mubr.f32.vlgmr.msra.gmra.mrb[0].mxu1 %v1935_v15  ;;  %1386 = vmatpush1.bf16.msra.mxu0 %v1385_v17  ;;  %v1407_v17 = vpack.c.bf16 %v267_v10, %v251_v9  ;;  %v1487_v5 = vpack.c.bf16 %v397_v62, %v381_v61  ;;  %v396_v6 = vld [vmem:[#allocation5 + $0xab0] sm:$0xff]  ;;  %v413_v9 = vld [vmem:[#allocation5 + $0xb38] sm:$0xff]  ;;  %v523_v46 = vld [vmem:[#allocation5 + $0xea8] sm:$0xff] }
  0x7c   :  { %1450 = vmatpush1.bf16.msra.mxu1 %v1449_v18  ;;  %1388 = vmatprep.subr.bf16.mxu0 %v1387_v19  ;;  %v250_v18 = vld [vmem:[#allocation5 + $0x620] sm:$0xff]  ;;  %v429_v10 = vld [vmem:[#allocation5 + $0xbb8] sm:$0xff]  ;;  %v1489_v12 = vpack.c.bf16 %v396_v6, %v380_v4  ;;  %v428_v20 = vld [vmem:[#allocation5 + $0xbb0] sm:$0xff] }
  0x7d   :  { %1452 = vmatprep.subr.bf16.mxu1 %v1451_v23  ;;  %772 = vmatprep.mubr.f32.mxu0 %v1931_v16  ;;  %v266_v19 = vld [vmem:[#allocation5 + $0x6a0] sm:$0xff]  ;;  %v283_v23 = vld [vmem:[#allocation5 + $0x728] sm:$0xff]  ;;  %v460_v32 = vld [vmem:[#allocation5 + $0xcb0] sm:$0xff] }
  0x7e   :  { %843 = vmatprep.mubr.f32.mxu1 %v1931_v16  ;;  %v1409_v27 = vpack.c.bf16 %v266_v19, %v250_v18  ;;  %v412_v18 = vld [vmem:[#allocation5 + $0xb30] sm:$0xff]  ;;  %v1491_v19 = vpack.c.bf16 %v429_v10, %v413_v9  ;;  %v555_v58 = vld [vmem:[#allocation5 + $0xfa8] sm:$0xff] }
  0x7f   :  { %1390 = vmatpush1.bf16.msra.mxu0 %v1389_v29  ;;  %v1411_v29 = vpack.c.bf16 %v299_v24, %v283_v23  ;;  %v445_v23 = vld [vmem:[#allocation5 + $0xc38] sm:$0xff]  ;;  %v1493_v26 = vpack.c.bf16 %v428_v20, %v412_v18  ;;  %v492_v44 = vld [vmem:[#allocation5 + $0xdb0] sm:$0xff]  ;;  %v79_v6 = vld [vmem:[#allocation5 + $0xc8] sm:$0xff] }
  0x80   :  { %1454 = vmatpush1.bf16.msra.mxu1 %v1453_v30  ;;  %1392 = vmatprep.subr.bf16.mxu0 %v1391_v31  ;;  %v282_v30 = vld [vmem:[#allocation5 + $0x720] sm:$0xff]  ;;  %v461_v24 = vld [vmem:[#allocation5 + $0xcb8] sm:$0xff]  ;;  %v524_v56 = vld [vmem:[#allocation5 + $0xeb0] sm:$0xff] }
  0x81   :  { %1456 = vmatprep.subr.bf16.mxu1 %v1455_v35  ;;  %v298_v31 = vld [vmem:[#allocation5 + $0x7a0] sm:$0xff]  ;;  %v315_v35 = vld [vmem:[#allocation5 + $0x828] sm:$0xff]  ;;  %v556_v4 = vld [vmem:[#allocation5 + $0xfb0] sm:$0xff] }
  0x82   :  { %v1413_v39 = vpack.c.bf16 %v298_v31, %v282_v30  ;;  %v444_v30 = vld [vmem:[#allocation5 + $0xc30] sm:$0xff]  ;;  %v1495_v31 = vpack.c.bf16 %v461_v24, %v445_v23  ;;  %v111_v20 = vld [vmem:[#allocation5 + $0x1c8] sm:$0xff] }
  0x83   :  { %1394 = vmatpush1.bf16.msra.mxu0 %v1393_v41  ;;  %v1415_v41 = vpack.c.bf16 %v331_v36, %v315_v35  ;;  %v477_v35 = vld [vmem:[#allocation5 + $0xd38] sm:$0xff]  ;;  %v1497_v38 = vpack.c.bf16 %v460_v32, %v444_v30  ;;  %v80_v18 = vld [vmem:[#allocation5 + $0xd0] sm:$0xff]  ;;  %v143_v32 = vld [vmem:[#allocation5 + $0x2c8] sm:$0xff] }
  0x84   :  { %1458 = vmatpush1.bf16.msra.mxu1 %v1457_v42  ;;  %1396 = vmatprep.subr.bf16.mxu0 %v1395_v43  ;;  %v314_v42 = vld [vmem:[#allocation5 + $0x820] sm:$0xff]  ;;  %v493_v36 = vld [vmem:[#allocation5 + $0xdb8] sm:$0xff]  ;;  %v112_v30 = vld [vmem:[#allocation5 + $0x1d0] sm:$0xff] }
  0x85   :  { %1460 = vmatprep.subr.bf16.mxu1 %v1459_v47  ;;  %v330_v43 = vld [vmem:[#allocation5 + $0x8a0] sm:$0xff]  ;;  %v347_v47 = vld [vmem:[#allocation5 + $0x928] sm:$0xff] }
  0x86   :  { %v1417_v51 = vpack.c.bf16 %v330_v43, %v314_v42  ;;  %v476_v42 = vld [vmem:[#allocation5 + $0xd30] sm:$0xff]  ;;  %v1499_v43 = vpack.c.bf16 %v493_v36, %v477_v35 }
  0x87   :  { %1398 = vmatpush1.bf16.msra.mxu0 %v1397_v53  ;;  %v1419_v53 = vpack.c.bf16 %v363_v48, %v347_v47  ;;  %v509_v47 = vld [vmem:[#allocation5 + $0xe38] sm:$0xff]  ;;  %v1501_v50 = vpack.c.bf16 %v492_v44, %v476_v42  ;;  %v144_v42 = vld [vmem:[#allocation5 + $0x2d0] sm:$0xff]  ;;  %v175_v44 = vld [vmem:[#allocation5 + $0x3c8] sm:$0xff] }
  0x88   :  { %1462 = vmatpush1.bf16.msra.mxu1 %v1461_v54  ;;  %1400 = vmatprep.subr.bf16.mxu0 %v1399_v55  ;;  %v346_v54 = vld [vmem:[#allocation5 + $0x920] sm:$0xff]  ;;  %v525_v48 = vld [vmem:[#allocation5 + $0xeb8] sm:$0xff] }
  0x89   :  { %1464 = vmatprep.subr.bf16.mxu1 %v1463_v59  ;;  %v362_v55 = vld [vmem:[#allocation5 + $0x9a0] sm:$0xff]  ;;  %v379_v59 = vld [vmem:[#allocation5 + $0xa28] sm:$0xff] }
  0x8a   :  { %v1421_v63 = vpack.c.bf16 %v362_v55, %v346_v54  ;;  %v508_v54 = vld [vmem:[#allocation5 + $0xe30] sm:$0xff]  ;;  %v1503_v55 = vpack.c.bf16 %v525_v48, %v509_v47 }
  0x8b   :  { %1402 = vmatpush1.bf16.msra.mxu0 %v1401_v1  ;;  %v1423_v1 = vpack.c.bf16 %v395_v60, %v379_v59  ;;  %v541_v59 = vld [vmem:[#allocation5 + $0xf38] sm:$0xff]  ;;  %v1505_v62 = vpack.c.bf16 %v524_v56, %v508_v54  ;;  %v191_v54 = vld [vmem:[#allocation5 + $0x448] sm:$0xff] }
  0x8c   :  { %1466 = vmatpush1.bf16.msra.mxu1 %v1465_v2  ;;  %1404 = vmatprep.subr.bf16.mxu0 %v1403_v3  ;;  %v378_v2 = vld [vmem:[#allocation5 + $0xa20] sm:$0xff]  ;;  %v557_v60 = vld [vmem:[#allocation5 + $0xfb8] sm:$0xff] }
  0x8d   :  { %1468 = vmatprep.subr.bf16.mxu1 %v1467_v7  ;;  %v394_v3 = vld [vmem:[#allocation5 + $0xaa0] sm:$0xff]  ;;  %v411_v7 = vld [vmem:[#allocation5 + $0xb28] sm:$0xff]  ;;  %v193_v56 = vld [vmem:[#allocation5 + $0x458] sm:$0xff] }
  0x8e   :  { %v1425_v11 = vpack.c.bf16 %v394_v3, %v378_v2  ;;  %v540_v2 = vld [vmem:[#allocation5 + $0xf30] sm:$0xff]  ;;  %v1507_v3 = vpack.c.bf16 %v557_v60, %v541_v59  ;;  %v190_v60 = vld [vmem:[#allocation5 + $0x440] sm:$0xff] }
  0x8f   :  { %1406 = vmatpush1.bf16.msra.mxu0 %v1405_v13  ;;  %v1427_v13 = vpack.c.bf16 %v427_v8, %v411_v7  ;;  %v65_v7 = vld [vmem:[#allocation5 + $0x58] sm:$0xff]  ;;  %v1509_v10 = vpack.c.bf16 %v556_v4, %v540_v2  ;;  %v239_v2 = vld [vmem:[#allocation5 + $0x5c8] sm:$0xff] }
  0x90   :  { %1470 = vmatpush1.bf16.msra.mxu1 %v1469_v14  ;;  %1408 = vmatprep.subr.bf16.mxu0 %v1407_v17  ;;  %v410_v14 = vld [vmem:[#allocation5 + $0xb20] sm:$0xff]  ;;  %v81_v8 = vld [vmem:[#allocation5 + $0xd8] sm:$0xff] }
  0x91   :  { %1472 = vmatprep.subr.bf16.mxu1 %v1471_v21  ;;  %v426_v17 = vld [vmem:[#allocation5 + $0xba0] sm:$0xff]  ;;  %v443_v21 = vld [vmem:[#allocation5 + $0xc28] sm:$0xff]  ;;  %v241_v4 = vld [vmem:[#allocation5 + $0x5d8] sm:$0xff] }
  0x92   :  { %v1429_v25 = vpack.c.bf16 %v426_v17, %v410_v14  ;;  %v64_v14 = vld [vmem:[#allocation5 + $0x50] sm:$0xff]  ;;  %v1575_v17 = vpack.c.bf16 %v81_v8, %v65_v7  ;;  %v222_v8 = vld [vmem:[#allocation5 + $0x540] sm:$0xff] }
  0x93   :  { %1410 = vmatpush1.bf16.msra.mxu0 %v1409_v27  ;;  %v1431_v27 = vpack.c.bf16 %v459_v22, %v443_v21  ;;  %v97_v21 = vld [vmem:[#allocation5 + $0x158] sm:$0xff]  ;;  %v1577_v24 = vpack.c.bf16 %v80_v18, %v64_v14  ;;  %v271_v14 = vld [vmem:[#allocation5 + $0x6c8] sm:$0xff] }
  0x94   :  { %1474 = vmatpush1.bf16.msra.mxu1 %v1473_v28  ;;  %1412 = vmatprep.subr.bf16.mxu0 %v1411_v29  ;;  %v442_v28 = vld [vmem:[#allocation5 + $0xc20] sm:$0xff]  ;;  %v113_v22 = vld [vmem:[#allocation5 + $0x1d8] sm:$0xff] }
  0x95   :  { %1476 = vmatprep.subr.bf16.mxu1 %v1475_v33  ;;  %v458_v29 = vld [vmem:[#allocation5 + $0xca0] sm:$0xff]  ;;  %v475_v33 = vld [vmem:[#allocation5 + $0xd28] sm:$0xff]  ;;  %v273_v18 = vld [vmem:[#allocation5 + $0x6d8] sm:$0xff] }
  0x96   :  { %v1433_v37 = vpack.c.bf16 %v458_v29, %v442_v28  ;;  %v96_v28 = vld [vmem:[#allocation5 + $0x150] sm:$0xff]  ;;  %v1579_v29 = vpack.c.bf16 %v113_v22, %v97_v21  ;;  %v254_v22 = vld [vmem:[#allocation5 + $0x640] sm:$0xff] }
  0x97   :  { %1414 = vmatpush1.bf16.msra.mxu0 %v1413_v39  ;;  %v1435_v39 = vpack.c.bf16 %v491_v34, %v475_v33  ;;  %v129_v33 = vld [vmem:[#allocation5 + $0x258] sm:$0xff]  ;;  %v1581_v36 = vpack.c.bf16 %v112_v30, %v96_v28  ;;  %v303_v28 = vld [vmem:[#allocation5 + $0x7c8] sm:$0xff] }
  0x98   :  { %1478 = vmatpush1.bf16.msra.mxu1 %v1477_v40  ;;  %1416 = vmatprep.subr.bf16.mxu0 %v1415_v41  ;;  %v474_v40 = vld [vmem:[#allocation5 + $0xd20] sm:$0xff]  ;;  %v145_v34 = vld [vmem:[#allocation5 + $0x2d8] sm:$0xff] }
  0x99   :  { %1480 = vmatprep.subr.bf16.mxu1 %v1479_v45  ;;  %v490_v41 = vld [vmem:[#allocation5 + $0xda0] sm:$0xff]  ;;  %v507_v45 = vld [vmem:[#allocation5 + $0xe28] sm:$0xff]  ;;  %v305_v30 = vld [vmem:[#allocation5 + $0x7d8] sm:$0xff] }
  0x9a   :  { %v1437_v49 = vpack.c.bf16 %v490_v41, %v474_v40  ;;  %v128_v40 = vld [vmem:[#allocation5 + $0x250] sm:$0xff]  ;;  %v1583_v41 = vpack.c.bf16 %v145_v34, %v129_v33  ;;  %v286_v34 = vld [vmem:[#allocation5 + $0x740] sm:$0xff] }
  0x9b   :  { %1418 = vmatpush1.bf16.msra.mxu0 %v1417_v51  ;;  %v1439_v51 = vpack.c.bf16 %v523_v46, %v507_v45  ;;  %v161_v45 = vld [vmem:[#allocation5 + $0x358] sm:$0xff]  ;;  %v1585_v47 = vpack.c.bf16 %v144_v42, %v128_v40  ;;  %v335_v40 = vld [vmem:[#allocation5 + $0x8c8] sm:$0xff] }
  0x9c   :  { %1482 = vmatpush1.bf16.msra.mxu1 %v1481_v52  ;;  %1420 = vmatprep.subr.bf16.mxu0 %v1419_v53  ;;  %v506_v52 = vld [vmem:[#allocation5 + $0xe20] sm:$0xff]  ;;  %v177_v46 = vld [vmem:[#allocation5 + $0x3d8] sm:$0xff] }
  0x9d   :  { %1484 = vmatprep.subr.bf16.mxu1 %v1483_v57  ;;  %v522_v53 = vld [vmem:[#allocation5 + $0xea0] sm:$0xff]  ;;  %v539_v57 = vld [vmem:[#allocation5 + $0xf28] sm:$0xff]  ;;  %v337_v42 = vld [vmem:[#allocation5 + $0x8d8] sm:$0xff] }
  0x9e   :  { %v1441_v61 = vpack.c.bf16 %v522_v53, %v506_v52  ;;  %v1587_v52 = vpack.c.bf16 %v177_v46, %v161_v45  ;;  %v176_v53 = vld [vmem:[#allocation5 + $0x3d0] sm:$0xff]  ;;  %v318_v46 = vld [vmem:[#allocation5 + $0x840] sm:$0xff] }
  0x9f   :  { %1422 = vmatpush1.bf16.msra.mxu0 %v1421_v63  ;;  %v1443_v63 = vpack.c.bf16 %v555_v58, %v539_v57  ;;  %v209_v57 = vld [vmem:[#allocation5 + $0x4d8] sm:$0xff] }
  0xa0   :  { %1486 = vmatpush1.bf16.msra.mxu1 %v1485_v0  ;;  %1424 = vmatprep.subr.bf16.mxu0 %v1423_v1  ;;  %v538_v0 = vld [vmem:[#allocation5 + $0xf20] sm:$0xff] }
  0xa1   :  { %1488 = vmatprep.subr.bf16.mxu1 %v1487_v5  ;;  %v554_v1 = vld [vmem:[#allocation5 + $0xfa0] sm:$0xff]  ;;  %v63_v5 = vld [vmem:[#allocation5 + $0x48] sm:$0xff] }
  0xa2   :  { %v1445_v9 = vpack.c.bf16 %v554_v1, %v538_v0  ;;  %v208_v0 = vld [vmem:[#allocation5 + $0x4d0] sm:$0xff]  ;;  %v223_v1 = vld [vmem:[#allocation5 + $0x548] sm:$0xff] }
  0xa3   :  { %1426 = vmatpush1.bf16.msra.mxu0 %v1425_v11  ;;  %v1511_v11 = vpack.c.bf16 %v79_v6, %v63_v5  ;;  %v1531_v7 = vpack.c.bf16 %v239_v2, %v223_v1 }
  0xa4   :  { %1490 = vmatpush1.bf16.msra.mxu1 %v1489_v12  ;;  %1428 = vmatprep.subr.bf16.mxu0 %v1427_v13  ;;  %v62_v12 = vld [vmem:[#allocation5 + $0x40] sm:$0xff] }
  0xa5   :  { %1492 = vmatprep.subr.bf16.mxu1 %v1491_v19  ;;  %v78_v13 = vld [vmem:[#allocation5 + $0xc0] sm:$0xff]  ;;  %v95_v19 = vld [vmem:[#allocation5 + $0x148] sm:$0xff] }
  0xa6   :  { %v1513_v23 = vpack.c.bf16 %v78_v13, %v62_v12  ;;  %v240_v12 = vld [vmem:[#allocation5 + $0x5d0] sm:$0xff]  ;;  %v255_v13 = vld [vmem:[#allocation5 + $0x648] sm:$0xff] }
  0xa7   :  { %1430 = vmatpush1.bf16.msra.mxu0 %v1429_v25  ;;  %v1515_v25 = vpack.c.bf16 %v111_v20, %v95_v19  ;;  %v1535_v21 = vpack.c.bf16 %v271_v14, %v255_v13 }
  0xa8   :  { %1494 = vmatpush1.bf16.msra.mxu1 %v1493_v26  ;;  %1432 = vmatprep.subr.bf16.mxu0 %v1431_v27  ;;  %v94_v26 = vld [vmem:[#allocation5 + $0x140] sm:$0xff] }
  0xa9   :  { %1496 = vmatprep.subr.bf16.mxu1 %v1495_v31  ;;  %v110_v27 = vld [vmem:[#allocation5 + $0x1c0] sm:$0xff]  ;;  %v127_v31 = vld [vmem:[#allocation5 + $0x248] sm:$0xff] }
  0xaa   :  { %v1517_v35 = vpack.c.bf16 %v110_v27, %v94_v26  ;;  %v272_v26 = vld [vmem:[#allocation5 + $0x6d0] sm:$0xff]  ;;  %v287_v27 = vld [vmem:[#allocation5 + $0x748] sm:$0xff] }
  0xab   :  { %1434 = vmatpush1.bf16.msra.mxu0 %v1433_v37  ;;  %v1519_v37 = vpack.c.bf16 %v143_v32, %v127_v31  ;;  %v1539_v33 = vpack.c.bf16 %v303_v28, %v287_v27 }
  0xac   :  { %1498 = vmatpush1.bf16.msra.mxu1 %v1497_v38  ;;  %1436 = vmatprep.subr.bf16.mxu0 %v1435_v39  ;;  %v126_v38 = vld [vmem:[#allocation5 + $0x240] sm:$0xff] }
  0xad   :  { %1500 = vmatprep.subr.bf16.mxu1 %v1499_v43  ;;  %v142_v39 = vld [vmem:[#allocation5 + $0x2c0] sm:$0xff]  ;;  %v159_v43 = vld [vmem:[#allocation5 + $0x348] sm:$0xff] }
  0xae   :  { %v1523_v48 = vpack.c.bf16 %v175_v44, %v159_v43 }
  0xaf   :  { %1438 = vmatpush1.bf16.msra.mxu0 %v1437_v49  ;;  %v158_v49 = vld [vmem:[#allocation5 + $0x340] sm:$0xff] }
  0xb0   :  { %1502 = vmatpush1.bf16.msra.mxu1 %v1501_v50  ;;  %1440 = vmatprep.subr.bf16.mxu0 %v1439_v51  ;;  %v174_v50 = vld [vmem:[#allocation5 + $0x3c0] sm:$0xff]  ;;  %v160_v51 = vld [vmem:[#allocation5 + $0x350] sm:$0xff] }
  0xb1   :  { %1504 = vmatprep.subr.bf16.mxu1 %v1503_v55  ;;  %v207_v55 = vld [vmem:[#allocation5 + $0x4c8] sm:$0xff]  ;;  %v1525_v58 = vpack.c.bf16 %v174_v50, %v158_v49  ;;  %v336_v49 = vld [vmem:[#allocation5 + $0x8d0] sm:$0xff] }
  0xb2   :  { %v1527_v59 = vpack.c.bf16 %v207_v55, %v191_v54  ;;  %v351_v50 = vld [vmem:[#allocation5 + $0x948] sm:$0xff] }
  0xb3   :  { %1442 = vmatpush1.bf16.msra.mxu0 %v1441_v61  ;;  %v206_v61 = vld [vmem:[#allocation5 + $0x4c0] sm:$0xff] }
  0xb4   :  { %1506 = vmatpush1.bf16.msra.mxu1 %v1505_v62  ;;  %1444 = vmatprep.subr.bf16.mxu0 %v1443_v63  ;;  %v192_v62 = vld [vmem:[#allocation5 + $0x450] sm:$0xff]  ;;  %v1591_v63 = vpack.c.bf16 %v209_v57, %v193_v56  ;;  %v1529_v5 = vpack.c.bf16 %v206_v61, %v190_v60  ;;  %v350_v57 = vld [vmem:[#allocation5 + $0x940] sm:$0xff]  ;;  %v383_v61 = vld [vmem:[#allocation5 + $0xa48] sm:$0xff] }
  0xb5   :  { %1508 = vmatprep.subr.bf16.mxu1 %v1507_v3  ;;  %v225_v3 = vld [vmem:[#allocation5 + $0x558] sm:$0xff]  ;;  %v1593_v6 = vpack.c.bf16 %v208_v0, %v192_v62  ;;  %v368_v60 = vld [vmem:[#allocation5 + $0x9d0] sm:$0xff]  ;;  %v399_v62 = vld [vmem:[#allocation5 + $0xac8] sm:$0xff] }
  0xb6   :  { %v401_v0 = vld [vmem:[#allocation5 + $0xad8] sm:$0xff] }
  0xb7   :  { %1446 = vmatpush1.bf16.msra.mxu0 %v1445_v9  ;;  %v238_v9 = vld [vmem:[#allocation5 + $0x5c0] sm:$0xff] }
  0xb8   :  { %1510 = vmatpush1.bf16.msra.mxu1 %v1509_v10  ;;  %1512 = vmatprep.subr.bf16.mxu0 %v1511_v11  ;;  %v224_v10 = vld [vmem:[#allocation5 + $0x550] sm:$0xff]  ;;  %v1595_v11 = vpack.c.bf16 %v241_v4, %v225_v3  ;;  %v1533_v19 = vpack.c.bf16 %v238_v9, %v222_v8  ;;  %v1551_v3 = vpack.c.bf16 %v399_v62, %v383_v61  ;;  %v382_v4 = vld [vmem:[#allocation5 + $0xa40] sm:$0xff]  ;;  %v415_v9 = vld [vmem:[#allocation5 + $0xb48] sm:$0xff] }
  0xb9   :  { %1576 = vmatprep.subr.bf16.mxu1 %v1575_v17  ;;  %v257_v17 = vld [vmem:[#allocation5 + $0x658] sm:$0xff]  ;;  %v1597_v20 = vpack.c.bf16 %v240_v12, %v224_v10  ;;  %v400_v8 = vld [vmem:[#allocation5 + $0xad0] sm:$0xff]  ;;  %v431_v10 = vld [vmem:[#allocation5 + $0xbc8] sm:$0xff] }
  0xba   :  { %773 = vmatmul.mubr.f32.vlgmr.msra.gmra.mrb[2].mxu0 %v1935_v15  ;;  %v433_v12 = vld [vmem:[#allocation5 + $0xbd8] sm:$0xff] }
  0xbb   :  { %844 = vmatmul.mubr.f32.vlgmr.msra.gmra.mrb[2].mxu1 %v1935_v15  ;;  %1514 = vmatpush1.bf16.msra.mxu0 %v1513_v23  ;;  %v1521_v15 = vpack.c.bf16 %v142_v39, %v126_v38  ;;  %v270_v23 = vld [vmem:[#allocation5 + $0x6c0] sm:$0xff]  ;;  %v304_v38 = vld [vmem:[#allocation5 + $0x7d0] sm:$0xff]  ;;  %v319_v39 = vld [vmem:[#allocation5 + $0x848] sm:$0xff] }
  0xbc   :  { %1578 = vmatpush1.bf16.msra.mxu1 %v1577_v24  ;;  %1516 = vmatprep.subr.bf16.mxu0 %v1515_v25  ;;  %v256_v24 = vld [vmem:[#allocation5 + $0x650] sm:$0xff]  ;;  %v1599_v25 = vpack.c.bf16 %v273_v18, %v257_v17  ;;  %v1537_v31 = vpack.c.bf16 %v270_v23, %v254_v22  ;;  %v1543_v45 = vpack.c.bf16 %v335_v40, %v319_v39  ;;  %v414_v18 = vld [vmem:[#allocation5 + $0xb40] sm:$0xff]  ;;  %v447_v23 = vld [vmem:[#allocation5 + $0xc48] sm:$0xff] }
  0xbd   :  { %1580 = vmatprep.subr.bf16.mxu1 %v1579_v29  ;;  %914 = vmatprep.mubr.f32.mxu0 %v1931_v16  ;;  %v289_v29 = vld [vmem:[#allocation5 + $0x758] sm:$0xff]  ;;  %v1601_v32 = vpack.c.bf16 %v272_v26, %v256_v24  ;;  %v1555_v17 = vpack.c.bf16 %v431_v10, %v415_v9  ;;  %v432_v22 = vld [vmem:[#allocation5 + $0xbd0] sm:$0xff]  ;;  %v463_v24 = vld [vmem:[#allocation5 + $0xcc8] sm:$0xff] }
  0xbe   :  { %985 = vmatprep.mubr.f32.mxu1 %v1931_v16  ;;  %v1589_v16 = vpack.c.bf16 %v176_v53, %v160_v51  ;;  %v367_v51 = vld [vmem:[#allocation5 + $0x9c8] sm:$0xff]  ;;  %v369_v53 = vld [vmem:[#allocation5 + $0x9d8] sm:$0xff] }
  0xbf   :  { %1518 = vmatpush1.bf16.msra.mxu0 %v1517_v35  ;;  %v302_v35 = vld [vmem:[#allocation5 + $0x7c0] sm:$0xff]  ;;  %v1547_v56 = vpack.c.bf16 %v367_v51, %v351_v50  ;;  %v465_v26 = vld [vmem:[#allocation5 + $0xcd8] sm:$0xff] }
  0xc0   :  { %1582 = vmatpush1.bf16.msra.mxu1 %v1581_v36  ;;  %1520 = vmatprep.subr.bf16.mxu0 %v1519_v37  ;;  %v288_v36 = vld [vmem:[#allocation5 + $0x750] sm:$0xff]  ;;  %v1603_v37 = vpack.c.bf16 %v305_v30, %v289_v29  ;;  %v1541_v43 = vpack.c.bf16 %v302_v35, %v286_v34  ;;  %v1559_v29 = vpack.c.bf16 %v463_v24, %v447_v23  ;;  %v446_v30 = vld [vmem:[#allocation5 + $0xc40] sm:$0xff]  ;;  %v479_v35 = vld [vmem:[#allocation5 + $0xd48] sm:$0xff] }
  0xc1   :  { %1584 = vmatprep.subr.bf16.mxu1 %v1583_v41  ;;  %v321_v41 = vld [vmem:[#allocation5 + $0x858] sm:$0xff]  ;;  %v1605_v44 = vpack.c.bf16 %v304_v38, %v288_v36  ;;  %v464_v34 = vld [vmem:[#allocation5 + $0xcd0] sm:$0xff]  ;;  %v495_v36 = vld [vmem:[#allocation5 + $0xdc8] sm:$0xff] }
  0xc2   :  { %v497_v38 = vld [vmem:[#allocation5 + $0xdd8] sm:$0xff] }
  0xc3   :  { %1522 = vmatpush1.bf16.msra.mxu0 %v1521_v15  ;;  %v334_v15 = vld [vmem:[#allocation5 + $0x8c0] sm:$0xff] }
  0xc4   :  { %1586 = vmatpush1.bf16.msra.mxu1 %v1585_v47  ;;  %1524 = vmatprep.subr.bf16.mxu0 %v1523_v48  ;;  %v320_v47 = vld [vmem:[#allocation5 + $0x850] sm:$0xff]  ;;  %v1607_v48 = vpack.c.bf16 %v337_v42, %v321_v41  ;;  %v1545_v54 = vpack.c.bf16 %v334_v15, %v318_v46  ;;  %v1563_v41 = vpack.c.bf16 %v495_v36, %v479_v35  ;;  %v478_v42 = vld [vmem:[#allocation5 + $0xd40] sm:$0xff]  ;;  %v511_v15 = vld [vmem:[#allocation5 + $0xe48] sm:$0xff] }
  0xc5   :  { %1588 = vmatprep.subr.bf16.mxu1 %v1587_v52  ;;  %v353_v52 = vld [vmem:[#allocation5 + $0x958] sm:$0xff]  ;;  %v1609_v55 = vpack.c.bf16 %v336_v49, %v320_v47  ;;  %v496_v46 = vld [vmem:[#allocation5 + $0xdd0] sm:$0xff]  ;;  %v527_v47 = vld [vmem:[#allocation5 + $0xec8] sm:$0xff] }
  0xc6   :  { %v529_v49 = vld [vmem:[#allocation5 + $0xed8] sm:$0xff] }
  0xc7   :  { %1526 = vmatpush1.bf16.msra.mxu0 %v1525_v58  ;;  %v366_v58 = vld [vmem:[#allocation5 + $0x9c0] sm:$0xff]  ;;  %v149_v35 = vld [vmem:[#allocation5 + $0x2f8] sm:$0xff] }
  0xc8   :  { %1590 = vmatpush1.bf16.msra.mxu1 %v1589_v16  ;;  %1528 = vmatprep.subr.bf16.mxu0 %v1527_v59  ;;  %v352_v16 = vld [vmem:[#allocation5 + $0x950] sm:$0xff]  ;;  %v1611_v59 = vpack.c.bf16 %v369_v53, %v353_v52  ;;  %v1549_v1 = vpack.c.bf16 %v366_v58, %v350_v57  ;;  %v1567_v52 = vpack.c.bf16 %v527_v47, %v511_v15  ;;  %v510_v53 = vld [vmem:[#allocation5 + $0xe40] sm:$0xff]  ;;  %v543_v58 = vld [vmem:[#allocation5 + $0xf48] sm:$0xff] }
  0xc9   :  { %1592 = vmatprep.subr.bf16.mxu1 %v1591_v63  ;;  %v385_v63 = vld [vmem:[#allocation5 + $0xa58] sm:$0xff]  ;;  %v1613_v2 = vpack.c.bf16 %v368_v60, %v352_v16  ;;  %v528_v57 = vld [vmem:[#allocation5 + $0xed0] sm:$0xff]  ;;  %v559_v16 = vld [vmem:[#allocation5 + $0xfc8] sm:$0xff] }
  0xca   :  { %v561_v60 = vld [vmem:[#allocation5 + $0xfd8] sm:$0xff] }
  0xcb   :  { %1530 = vmatpush1.bf16.msra.mxu0 %v1529_v5  ;;  %v398_v5 = vld [vmem:[#allocation5 + $0xac0] sm:$0xff]  ;;  %v165_v15 = vld [vmem:[#allocation5 + $0x378] sm:$0xff] }
  0xcc   :  { %1594 = vmatpush1.bf16.msra.mxu1 %v1593_v6  ;;  %1532 = vmatprep.subr.bf16.mxu0 %v1531_v7  ;;  %v384_v6 = vld [vmem:[#allocation5 + $0xa50] sm:$0xff]  ;;  %v1615_v7 = vpack.c.bf16 %v401_v0, %v385_v63  ;;  %v1553_v13 = vpack.c.bf16 %v398_v5, %v382_v4  ;;  %v1571_v63 = vpack.c.bf16 %v559_v16, %v543_v58  ;;  %v542_v0 = vld [vmem:[#allocation5 + $0xf40] sm:$0xff]  ;;  %v67_v5 = vld [vmem:[#allocation5 + $0x68] sm:$0xff] }
  0xcd   :  { %1596 = vmatprep.subr.bf16.mxu1 %v1595_v11  ;;  %v417_v11 = vld [vmem:[#allocation5 + $0xb58] sm:$0xff]  ;;  %v1617_v14 = vpack.c.bf16 %v400_v8, %v384_v6  ;;  %v560_v4 = vld [vmem:[#allocation5 + $0xfd0] sm:$0xff]  ;;  %v83_v6 = vld [vmem:[#allocation5 + $0xe8] sm:$0xff] }
  0xce   :  { %v85_v8 = vld [vmem:[#allocation5 + $0xf8] sm:$0xff] }
  0xcf   :  { %1534 = vmatpush1.bf16.msra.mxu0 %v1533_v19  ;;  %v430_v19 = vld [vmem:[#allocation5 + $0xbc0] sm:$0xff]  ;;  %v181_v47 = vld [vmem:[#allocation5 + $0x3f8] sm:$0xff] }
  0xd0   :  { %1598 = vmatpush1.bf16.msra.mxu1 %v1597_v20  ;;  %1536 = vmatprep.subr.bf16.mxu0 %v1535_v21  ;;  %v416_v20 = vld [vmem:[#allocation5 + $0xb50] sm:$0xff]  ;;  %v1619_v21 = vpack.c.bf16 %v433_v12, %v417_v11  ;;  %v1557_v27 = vpack.c.bf16 %v430_v19, %v414_v18  ;;  %v1639_v11 = vpack.c.bf16 %v83_v6, %v67_v5  ;;  %v66_v12 = vld [vmem:[#allocation5 + $0x60] sm:$0xff]  ;;  %v99_v19 = vld [vmem:[#allocation5 + $0x168] sm:$0xff] }
  0xd1   :  { %1600 = vmatprep.subr.bf16.mxu1 %v1599_v25  ;;  %v449_v25 = vld [vmem:[#allocation5 + $0xc58] sm:$0xff]  ;;  %v1621_v28 = vpack.c.bf16 %v432_v22, %v416_v20  ;;  %v84_v18 = vld [vmem:[#allocation5 + $0xf0] sm:$0xff]  ;;  %v115_v20 = vld [vmem:[#allocation5 + $0x1e8] sm:$0xff] }
  0xd2   :  { %v117_v22 = vld [vmem:[#allocation5 + $0x1f8] sm:$0xff] }
  0xd3   :  { %1538 = vmatpush1.bf16.msra.mxu0 %v1537_v31  ;;  %v462_v31 = vld [vmem:[#allocation5 + $0xcc0] sm:$0xff]  ;;  %v197_v58 = vld [vmem:[#allocation5 + $0x478] sm:$0xff] }
  0xd4   :  { %1602 = vmatpush1.bf16.msra.mxu1 %v1601_v32  ;;  %1540 = vmatprep.subr.bf16.mxu0 %v1539_v33  ;;  %v448_v32 = vld [vmem:[#allocation5 + $0xc50] sm:$0xff]  ;;  %v1623_v33 = vpack.c.bf16 %v465_v26, %v449_v25  ;;  %v1561_v39 = vpack.c.bf16 %v462_v31, %v446_v30  ;;  %v1643_v25 = vpack.c.bf16 %v115_v20, %v99_v19  ;;  %v98_v26 = vld [vmem:[#allocation5 + $0x160] sm:$0xff]  ;;  %v131_v31 = vld [vmem:[#allocation5 + $0x268] sm:$0xff] }
  0xd5   :  { %1604 = vmatprep.subr.bf16.mxu1 %v1603_v37  ;;  %v481_v37 = vld [vmem:[#allocation5 + $0xd58] sm:$0xff]  ;;  %v1625_v40 = vpack.c.bf16 %v464_v34, %v448_v32  ;;  %v116_v30 = vld [vmem:[#allocation5 + $0x1f0] sm:$0xff]  ;;  %v147_v32 = vld [vmem:[#allocation5 + $0x2e8] sm:$0xff] }
  0xd6   :  { %v133_v34 = vld [vmem:[#allocation5 + $0x278] sm:$0xff] }
  0xd7   :  { %1542 = vmatpush1.bf16.msra.mxu0 %v1541_v43  ;;  %v494_v43 = vld [vmem:[#allocation5 + $0xdc0] sm:$0xff]  ;;  %v213_v16 = vld [vmem:[#allocation5 + $0x4f8] sm:$0xff] }
  0xd8   :  { %1606 = vmatpush1.bf16.msra.mxu1 %v1605_v44  ;;  %1544 = vmatprep.subr.bf16.mxu0 %v1543_v45  ;;  %v480_v44 = vld [vmem:[#allocation5 + $0xd50] sm:$0xff]  ;;  %v1627_v45 = vpack.c.bf16 %v497_v38, %v481_v37  ;;  %v1565_v50 = vpack.c.bf16 %v494_v43, %v478_v42  ;;  %v1647_v38 = vpack.c.bf16 %v147_v32, %v131_v31  ;;  %v229_v5 = vld [vmem:[#allocation5 + $0x578] sm:$0xff] }
  0xd9   :  { %1608 = vmatprep.subr.bf16.mxu1 %v1607_v48  ;;  %v513_v48 = vld [vmem:[#allocation5 + $0xe58] sm:$0xff]  ;;  %v1629_v51 = vpack.c.bf16 %v496_v46, %v480_v44  ;;  %v1711_v42 = vpack.c.bf16 %v149_v35, %v133_v34  ;;  %v148_v43 = vld [vmem:[#allocation5 + $0x2f0] sm:$0xff]  ;;  %v163_v44 = vld [vmem:[#allocation5 + $0x368] sm:$0xff] }
  0xda   :  { %v1774_v46 = vld [vmem:[#allocation2 + $0x8] sm:$0xff] }
  0xdb   :  { %1546 = vmatpush1.bf16.msra.mxu0 %v1545_v54  ;;  %v526_v54 = vld [vmem:[#allocation5 + $0xec0] sm:$0xff]  ;;  %v245_v6 = vld [vmem:[#allocation5 + $0x5f8] sm:$0xff] }
  0xdc   :  { %1610 = vmatpush1.bf16.msra.mxu1 %v1609_v55  ;;  %1548 = vmatprep.subr.bf16.mxu0 %v1547_v56  ;;  %v512_v55 = vld [vmem:[#allocation5 + $0xe50] sm:$0xff]  ;;  %v1631_v56 = vpack.c.bf16 %v529_v49, %v513_v48  ;;  %v1569_v61 = vpack.c.bf16 %v526_v54, %v510_v53  ;;  %v1715_v54 = vpack.c.bf16 %v181_v47, %v165_v15  ;;  %v261_v19 = vld [vmem:[#allocation5 + $0x678] sm:$0xff] }
  0xdd   :  { %1612 = vmatprep.subr.bf16.mxu1 %v1611_v59  ;;  %v545_v59 = vld [vmem:[#allocation5 + $0xf58] sm:$0xff]  ;;  %v1633_v62 = vpack.c.bf16 %v528_v57, %v512_v55  ;;  %v164_v53 = vld [vmem:[#allocation5 + $0x370] sm:$0xff]  ;;  %v211_v57 = vld [vmem:[#allocation5 + $0x4e8] sm:$0xff] }
  0xde   :  { %v180_v55 = vld [vmem:[#allocation5 + $0x3f0] sm:$0xff]  ;;  %v277_v20 = vld [vmem:[#allocation5 + $0x6f8] sm:$0xff] }
  0xdf   :  { %1550 = vmatpush1.bf16.msra.mxu0 %v1549_v1  ;;  %v558_v1 = vld [vmem:[#allocation5 + $0xfc0] sm:$0xff]  ;;  %v293_v31 = vld [vmem:[#allocation5 + $0x778] sm:$0xff] }
  0xe0   :  { %1614 = vmatpush1.bf16.msra.mxu1 %v1613_v2  ;;  %1552 = vmatprep.subr.bf16.mxu0 %v1551_v3  ;;  %v544_v2 = vld [vmem:[#allocation5 + $0xf50] sm:$0xff]  ;;  %v1635_v3 = vpack.c.bf16 %v561_v60, %v545_v59  ;;  %v1573_v9 = vpack.c.bf16 %v558_v1, %v542_v0  ;;  %v1717_v60 = vpack.c.bf16 %v180_v55, %v164_v53  ;;  %v309_v32 = vld [vmem:[#allocation5 + $0x7f8] sm:$0xff]  ;;  %v355_v53 = vld [vmem:[#allocation5 + $0x968] sm:$0xff] }
  0xe1   :  { %1616 = vmatprep.subr.bf16.mxu1 %v1615_v7  ;;  %v69_v7 = vld [vmem:[#allocation5 + $0x78] sm:$0xff]  ;;  %v1637_v10 = vpack.c.bf16 %v560_v4, %v544_v2  ;;  %v196_v0 = vld [vmem:[#allocation5 + $0x470] sm:$0xff]  ;;  %v1719_v1 = vpack.c.bf16 %v213_v16, %v197_v58  ;;  %v243_v4 = vld [vmem:[#allocation5 + $0x5e8] sm:$0xff] }
  0xe2   :  { %v212_v2 = vld [vmem:[#allocation5 + $0x4f0] sm:$0xff]  ;;  %v357_v55 = vld [vmem:[#allocation5 + $0x978] sm:$0xff] }
  0xe3   :  { %1554 = vmatpush1.bf16.msra.mxu0 %v1553_v13  ;;  %v82_v13 = vld [vmem:[#allocation5 + $0xe0] sm:$0xff] }
  0xe4   :  { %1618 = vmatpush1.bf16.msra.mxu1 %v1617_v14  ;;  %1556 = vmatprep.subr.bf16.mxu0 %v1555_v17  ;;  %v68_v14 = vld [vmem:[#allocation5 + $0x70] sm:$0xff]  ;;  %v1703_v17 = vpack.c.bf16 %v85_v8, %v69_v7  ;;  %v1641_v23 = vpack.c.bf16 %v82_v13, %v66_v12  ;;  %v1721_v8 = vpack.c.bf16 %v212_v2, %v196_v0  ;;  %v387_v0 = vld [vmem:[#allocation5 + $0xa68] sm:$0xff]  ;;  %v389_v2 = vld [vmem:[#allocation5 + $0xa78] sm:$0xff] }
  0xe5   :  { %1620 = vmatprep.subr.bf16.mxu1 %v1619_v21  ;;  %v101_v21 = vld [vmem:[#allocation5 + $0x178] sm:$0xff]  ;;  %v1705_v24 = vpack.c.bf16 %v84_v18, %v68_v14  ;;  %v228_v12 = vld [vmem:[#allocation5 + $0x570] sm:$0xff]  ;;  %v1723_v13 = vpack.c.bf16 %v245_v6, %v229_v5  ;;  %v275_v18 = vld [vmem:[#allocation5 + $0x6e8] sm:$0xff] }
  0xe6   :  { %v244_v14 = vld [vmem:[#allocation5 + $0x5f0] sm:$0xff] }
  0xe7   :  { %1558 = vmatpush1.bf16.msra.mxu0 %v1557_v27  ;;  %v114_v27 = vld [vmem:[#allocation5 + $0x1e0] sm:$0xff] }
  0xe8   :  { %1622 = vmatpush1.bf16.msra.mxu1 %v1621_v28  ;;  %1560 = vmatprep.subr.bf16.mxu0 %v1559_v29  ;;  %v100_v28 = vld [vmem:[#allocation5 + $0x170] sm:$0xff]  ;;  %v1707_v29 = vpack.c.bf16 %v117_v22, %v101_v21  ;;  %v1645_v36 = vpack.c.bf16 %v114_v27, %v98_v26  ;;  %v1725_v22 = vpack.c.bf16 %v244_v14, %v228_v12  ;;  %v419_v12 = vld [vmem:[#allocation5 + $0xb68] sm:$0xff]  ;;  %v421_v14 = vld [vmem:[#allocation5 + $0xb78] sm:$0xff] }
  0xe9   :  { %1624 = vmatprep.subr.bf16.mxu1 %v1623_v33  ;;  %v1945_v33 = vld [vmem:[#allocation2] sm:$0xff]  ;;  %v1709_v37 = vpack.c.bf16 %v116_v30, %v100_v28  ;;  %v1727_v27 = vpack.c.bf16 %v277_v20, %v261_v19  ;;  %v307_v30 = vld [vmem:[#allocation5 + $0x7e8] sm:$0xff] }
  0xea   :  { %v260_v26 = vld [vmem:[#allocation5 + $0x670] sm:$0xff] }
  0xeb   :  { %1562 = vmatpush1.bf16.msra.mxu0 %v1561_v39  ;;  %v130_v39 = vld [vmem:[#allocation5 + $0x260] sm:$0xff]  ;;  %v276_v28 = vld [vmem:[#allocation5 + $0x6f0] sm:$0xff] }
  0xec   :  { %1626 = vmatpush1.bf16.msra.mxu1 %v1625_v40  ;;  %1564 = vmatprep.subr.bf16.mxu0 %v1563_v41  ;;  %v146_v40 = vld [vmem:[#allocation5 + $0x2e0] sm:$0xff]  ;;  %v132_v41 = vld [vmem:[#allocation5 + $0x270] sm:$0xff]  ;;  %v1729_v35 = vpack.c.bf16 %v276_v28, %v260_v26  ;;  %v451_v26 = vld [vmem:[#allocation5 + $0xc68] sm:$0xff] }
  0xed   :  { %1628 = vmatprep.subr.bf16.mxu1 %v1627_v45  ;;  %v179_v45 = vld [vmem:[#allocation5 + $0x3e8] sm:$0xff]  ;;  %v1649_v48 = vpack.c.bf16 %v146_v40, %v130_v39  ;;  %v1713_v49 = vpack.c.bf16 %v148_v43, %v132_v41  ;;  %v292_v39 = vld [vmem:[#allocation5 + $0x770] sm:$0xff]  ;;  %v1731_v40 = vpack.c.bf16 %v309_v32, %v293_v31  ;;  %v453_v28 = vld [vmem:[#allocation5 + $0xc78] sm:$0xff] }
  0xee   :  { %v308_v41 = vld [vmem:[#allocation5 + $0x7f0] sm:$0xff]  ;;  %v339_v43 = vld [vmem:[#allocation5 + $0x8e8] sm:$0xff] }
  0xef   :  { %1566 = vmatpush1.bf16.msra.mxu0 %v1565_v50  ;;  %v1651_v50 = vpack.c.bf16 %v179_v45, %v163_v44  ;;  %v325_v44 = vld [vmem:[#allocation5 + $0x878] sm:$0xff]  ;;  %v1733_v15 = vpack.c.bf16 %v308_v41, %v292_v39  ;;  %v483_v39 = vld [vmem:[#allocation5 + $0xd68] sm:$0xff] }
  0xf0   :  { %1630 = vmatpush1.bf16.msra.mxu1 %v1629_v51  ;;  %1568 = vmatprep.subr.bf16.mxu0 %v1567_v52  ;;  %v162_v51 = vld [vmem:[#allocation5 + $0x360] sm:$0xff]  ;;  %v341_v45 = vld [vmem:[#allocation5 + $0x8f8] sm:$0xff] }
  0xf1   :  { %1632 = vmatprep.subr.bf16.mxu1 %v1631_v56  ;;  %v178_v52 = vld [vmem:[#allocation5 + $0x3e0] sm:$0xff]  ;;  %v195_v56 = vld [vmem:[#allocation5 + $0x468] sm:$0xff]  ;;  %v485_v41 = vld [vmem:[#allocation5 + $0xd78] sm:$0xff] }
  0xf2   :  { %v1653_v59 = vpack.c.bf16 %v178_v52, %v162_v51  ;;  %v1735_v51 = vpack.c.bf16 %v341_v45, %v325_v44  ;;  %v340_v52 = vld [vmem:[#allocation5 + $0x8f0] sm:$0xff] }
  0xf3   :  { %1570 = vmatpush1.bf16.msra.mxu0 %v1569_v61  ;;  %v1655_v61 = vpack.c.bf16 %v211_v57, %v195_v56  ;;  %v373_v56 = vld [vmem:[#allocation5 + $0x9f8] sm:$0xff] }
  0xf4   :  { %1634 = vmatpush1.bf16.msra.mxu1 %v1633_v62  ;;  %1572 = vmatprep.subr.bf16.mxu0 %v1571_v63  ;;  %v194_v62 = vld [vmem:[#allocation5 + $0x460] sm:$0xff] }
  0xf5   :  { %1636 = vmatprep.subr.bf16.mxu1 %v1635_v3  ;;  %v210_v63 = vld [vmem:[#allocation5 + $0x4e0] sm:$0xff]  ;;  %v227_v3 = vld [vmem:[#allocation5 + $0x568] sm:$0xff] }
  0xf6   :  { %v1657_v7 = vpack.c.bf16 %v210_v63, %v194_v62  ;;  %v1739_v62 = vpack.c.bf16 %v373_v56, %v357_v55  ;;  %v372_v63 = vld [vmem:[#allocation5 + $0x9f0] sm:$0xff] }
  0xf7   :  { %1574 = vmatpush1.bf16.msra.mxu0 %v1573_v9  ;;  %v1659_v9 = vpack.c.bf16 %v243_v4, %v227_v3  ;;  %v405_v3 = vld [vmem:[#allocation5 + $0xaf8] sm:$0xff] }
  0xf8   :  { %1638 = vmatpush1.bf16.msra.mxu1 %v1637_v10  ;;  %1640 = vmatprep.subr.bf16.mxu0 %v1639_v11  ;;  %v226_v10 = vld [vmem:[#allocation5 + $0x560] sm:$0xff] }
  0xf9   :  { %1704 = vmatprep.subr.bf16.mxu1 %v1703_v17  ;;  %v242_v11 = vld [vmem:[#allocation5 + $0x5e0] sm:$0xff]  ;;  %v259_v17 = vld [vmem:[#allocation5 + $0x668] sm:$0xff] }
  0xfa   :  { %915 = vmatmul.mubr.f32.vlgmr.msra.gmra.mrb[4].mxu0 %v1945_v33  ;;  %v1661_v21 = vpack.c.bf16 %v242_v11, %v226_v10  ;;  %v1743_v10 = vpack.c.bf16 %v405_v3, %v389_v2  ;;  %v404_v11 = vld [vmem:[#allocation5 + $0xaf0] sm:$0xff] }
  0xfb   :  { %986 = vmatmul.mubr.f32.vlgmr.msra.gmra.mrb[4].mxu1 %v1945_v33  ;;  %1642 = vmatpush1.bf16.msra.mxu0 %v1641_v23  ;;  %v1663_v23 = vpack.c.bf16 %v275_v18, %v259_v17  ;;  %v437_v17 = vld [vmem:[#allocation5 + $0xbf8] sm:$0xff] }
  0xfc   :  { %1706 = vmatpush1.bf16.msra.mxu1 %v1705_v24  ;;  %1644 = vmatprep.subr.bf16.mxu0 %v1643_v25  ;;  %v258_v24 = vld [vmem:[#allocation5 + $0x660] sm:$0xff] }
  0xfd   :  { %1708 = vmatprep.subr.bf16.mxu1 %v1707_v29  ;;  %1056 = vmatprep.mubr.f32.mxu0 %v1774_v46  ;;  %v274_v25 = vld [vmem:[#allocation5 + $0x6e0] sm:$0xff]  ;;  %v291_v29 = vld [vmem:[#allocation5 + $0x768] sm:$0xff] }
  0xfe   :  { %1127 = vmatprep.mubr.f32.mxu1 %v1774_v46  ;;  %v1665_v34 = vpack.c.bf16 %v274_v25, %v258_v24  ;;  %v1747_v24 = vpack.c.bf16 %v437_v17, %v421_v14  ;;  %v436_v25 = vld [vmem:[#allocation5 + $0xbf0] sm:$0xff]  ;;  %v1134_v17 = vlaneseq }
  0xff   :  { %1646 = vmatpush1.bf16.msra.mxu0 %v1645_v36  ;;  %v1667_v36 = vpack.c.bf16 %v307_v30, %v291_v29  ;;  %v469_v29 = vld [vmem:[#allocation5 + $0xcf8] sm:$0xff] }
 0x100   :  { %1710 = vmatpush1.bf16.msra.mxu1 %v1709_v37  ;;  %1648 = vmatprep.subr.bf16.mxu0 %v1647_v38  ;;  %v290_v37 = vld [vmem:[#allocation5 + $0x760] sm:$0xff] }
 0x101   :  { %1712 = vmatprep.subr.bf16.mxu1 %v1711_v42  ;;  %v306_v38 = vld [vmem:[#allocation5 + $0x7e0] sm:$0xff]  ;;  %v323_v42 = vld [vmem:[#allocation5 + $0x868] sm:$0xff] }
 0x102   :  { %v1669_v46 = vpack.c.bf16 %v306_v38, %v290_v37  ;;  %v1671_v47 = vpack.c.bf16 %v339_v43, %v323_v42  ;;  %v1751_v37 = vpack.c.bf16 %v469_v29, %v453_v28  ;;  %v468_v38 = vld [vmem:[#allocation5 + $0xcf0] sm:$0xff]  ;;  %v501_v42 = vld [vmem:[#allocation5 + $0xdf8] sm:$0xff] }
 0x103   :  { %1650 = vmatpush1.bf16.msra.mxu0 %v1649_v48  ;;  %v322_v48 = vld [vmem:[#allocation5 + $0x860] sm:$0xff] }
 0x104   :  { %1714 = vmatpush1.bf16.msra.mxu1 %v1713_v49  ;;  %1652 = vmatprep.subr.bf16.mxu0 %v1651_v50  ;;  %v338_v49 = vld [vmem:[#allocation5 + $0x8e0] sm:$0xff]  ;;  %v324_v50 = vld [vmem:[#allocation5 + $0x870] sm:$0xff] }
 0x105   :  { %1716 = vmatprep.subr.bf16.mxu1 %v1715_v54  ;;  %v371_v54 = vld [vmem:[#allocation5 + $0x9e8] sm:$0xff]  ;;  %v1673_v57 = vpack.c.bf16 %v338_v49, %v322_v48  ;;  %v1737_v58 = vpack.c.bf16 %v340_v52, %v324_v50  ;;  %v1755_v48 = vpack.c.bf16 %v501_v42, %v485_v41  ;;  %v500_v49 = vld [vmem:[#allocation5 + $0xdf0] sm:$0xff]  ;;  %v517_v52 = vld [vmem:[#allocation5 + $0xe78] sm:$0xff] }
 0x106   :  { %v1675_v16 = vpack.c.bf16 %v371_v54, %v355_v53  ;;  %v515_v50 = vld [vmem:[#allocation5 + $0xe68] sm:$0xff]  ;;  %v533_v53 = vld [vmem:[#allocation5 + $0xef8] sm:$0xff] }
 0x107   :  { %1654 = vmatpush1.bf16.msra.mxu0 %v1653_v59  ;;  %v354_v59 = vld [vmem:[#allocation5 + $0x960] sm:$0xff] }
 0x108   :  { %1718 = vmatpush1.bf16.msra.mxu1 %v1717_v60  ;;  %1656 = vmatprep.subr.bf16.mxu0 %v1655_v61  ;;  %v370_v60 = vld [vmem:[#allocation5 + $0x9e0] sm:$0xff]  ;;  %v356_v61 = vld [vmem:[#allocation5 + $0x970] sm:$0xff] }
 0x109   :  { %1720 = vmatprep.subr.bf16.mxu1 %v1719_v1  ;;  %v403_v1 = vld [vmem:[#allocation5 + $0xae8] sm:$0xff]  ;;  %v1677_v4 = vpack.c.bf16 %v370_v60, %v354_v59  ;;  %v1741_v5 = vpack.c.bf16 %v372_v63, %v356_v61  ;;  %v1759_v59 = vpack.c.bf16 %v533_v53, %v517_v52  ;;  %v532_v60 = vld [vmem:[#allocation5 + $0xef0] sm:$0xff]  ;;  %v549_v63 = vld [vmem:[#allocation5 + $0xf78] sm:$0xff] }
 0x10a   :  { %v1679_v6 = vpack.c.bf16 %v403_v1, %v387_v0  ;;  %v547_v61 = vld [vmem:[#allocation5 + $0xf68] sm:$0xff]  ;;  %v565_v0 = vld [vmem:[#allocation5 + $0xff8] sm:$0xff]  ;;  %v1174_v52 = vld [vmem:[#allocation7] ss:$2 sm:$0xf] }
 0x10b   :  { %1658 = vmatpush1.bf16.msra.mxu0 %v1657_v7  ;;  %v386_v7 = vld [vmem:[#allocation5 + $0xa60] sm:$0xff] }
 0x10c   :  { %1722 = vmatpush1.bf16.msra.mxu1 %v1721_v8  ;;  %1660 = vmatprep.subr.bf16.mxu0 %v1659_v9  ;;  %v402_v8 = vld [vmem:[#allocation5 + $0xae0] sm:$0xff]  ;;  %v388_v9 = vld [vmem:[#allocation5 + $0xa70] sm:$0xff] }
 0x10d   :  { %1724 = vmatprep.subr.bf16.mxu1 %v1723_v13  ;;  %v435_v13 = vld [vmem:[#allocation5 + $0xbe8] sm:$0xff]  ;;  %v1681_v18 = vpack.c.bf16 %v402_v8, %v386_v7  ;;  %v1745_v19 = vpack.c.bf16 %v404_v11, %v388_v9  ;;  %v548_v7 = vld [vmem:[#allocation5 + $0xf70] sm:$0xff] }
 0x10e   :  { %v1683_v20 = vpack.c.bf16 %v435_v13, %v419_v12  ;;  %v564_v8 = vld [vmem:[#allocation5 + $0xff0] sm:$0xff] }
 0x10f   :  { %1662 = vmatpush1.bf16.msra.mxu0 %v1661_v21  ;;  %v418_v21 = vld [vmem:[#allocation5 + $0xb60] sm:$0xff] }
 0x110   :  { %1726 = vmatpush1.bf16.msra.mxu1 %v1725_v22  ;;  %1664 = vmatprep.subr.bf16.mxu0 %v1663_v23  ;;  %v434_v22 = vld [vmem:[#allocation5 + $0xbe0] sm:$0xff]  ;;  %v420_v23 = vld [vmem:[#allocation5 + $0xb70] sm:$0xff] }
 0x111   :  { %1728 = vmatprep.subr.bf16.mxu1 %v1727_v27  ;;  %v467_v27 = vld [vmem:[#allocation5 + $0xce8] sm:$0xff]  ;;  %v1685_v30 = vpack.c.bf16 %v434_v22, %v418_v21  ;;  %v1749_v31 = vpack.c.bf16 %v436_v25, %v420_v23 }
 0x112   :  { %v1687_v32 = vpack.c.bf16 %v467_v27, %v451_v26 }
 0x113   :  { %1666 = vmatpush1.bf16.msra.mxu0 %v1665_v34  ;;  %v450_v34 = vld [vmem:[#allocation5 + $0xc60] sm:$0xff] }
 0x114   :  { %1730 = vmatpush1.bf16.msra.mxu1 %v1729_v35  ;;  %1668 = vmatprep.subr.bf16.mxu0 %v1667_v36  ;;  %v466_v35 = vld [vmem:[#allocation5 + $0xce0] sm:$0xff]  ;;  %v452_v36 = vld [vmem:[#allocation5 + $0xc70] sm:$0xff] }
 0x115   :  { %1732 = vmatprep.subr.bf16.mxu1 %v1731_v40  ;;  %v499_v40 = vld [vmem:[#allocation5 + $0xde8] sm:$0xff]  ;;  %v1689_v43 = vpack.c.bf16 %v466_v35, %v450_v34  ;;  %v1753_v44 = vpack.c.bf16 %v468_v38, %v452_v36 }
 0x116   :  { %v1691_v45 = vpack.c.bf16 %v499_v40, %v483_v39 }
 0x117   :  { %1670 = vmatpush1.bf16.msra.mxu0 %v1669_v46  ;;  %v482_v46 = vld [vmem:[#allocation5 + $0xd60] sm:$0xff] }
 0x118   :  { %1734 = vmatpush1.bf16.msra.mxu1 %v1733_v15  ;;  %1672 = vmatprep.subr.bf16.mxu0 %v1671_v47  ;;  %v498_v15 = vld [vmem:[#allocation5 + $0xde0] sm:$0xff]  ;;  %v484_v47 = vld [vmem:[#allocation5 + $0xd70] sm:$0xff] }
 0x119   :  { %1736 = vmatprep.subr.bf16.mxu1 %v1735_v51  ;;  %v531_v51 = vld [vmem:[#allocation5 + $0xee8] sm:$0xff]  ;;  %v1693_v54 = vpack.c.bf16 %v498_v15, %v482_v46  ;;  %v1757_v55 = vpack.c.bf16 %v500_v49, %v484_v47 }
 0x11a   :  { %v1695_v56 = vpack.c.bf16 %v531_v51, %v515_v50 }
 0x11b   :  { %1674 = vmatpush1.bf16.msra.mxu0 %v1673_v57  ;;  %v514_v57 = vld [vmem:[#allocation5 + $0xe60] sm:$0xff] }
 0x11c   :  { %1738 = vmatpush1.bf16.msra.mxu1 %v1737_v58  ;;  %1676 = vmatprep.subr.bf16.mxu0 %v1675_v16  ;;  %v530_v58 = vld [vmem:[#allocation5 + $0xee0] sm:$0xff]  ;;  %v516_v16 = vld [vmem:[#allocation5 + $0xe70] sm:$0xff] }
 0x11d   :  { %1740 = vmatprep.subr.bf16.mxu1 %v1739_v62  ;;  %v563_v62 = vld [vmem:[#allocation5 + $0xfe8] sm:$0xff]  ;;  %v1697_v1 = vpack.c.bf16 %v530_v58, %v514_v57  ;;  %v1761_v2 = vpack.c.bf16 %v532_v60, %v516_v16  ;;  %v1209_v60 = vld [vmem:[#allocation7 + $0x1] ss:$2 sm:$0xf] }
 0x11e   :  { %v1699_v3 = vpack.c.bf16 %v563_v62, %v547_v61 }
 0x11f   :  { %1678 = vmatpush1.bf16.msra.mxu0 %v1677_v4  ;;  %v546_v4 = vld [vmem:[#allocation5 + $0xf60] sm:$0xff] }
 0x120   :  { %1742 = vmatpush1.bf16.msra.mxu1 %v1741_v5  ;;  %1680 = vmatprep.subr.bf16.mxu0 %v1679_v6  ;;  %v562_v5 = vld [vmem:[#allocation5 + $0xfe0] sm:$0xff]  ;;  %v1763_v6 = vpack.c.bf16 %v565_v0, %v549_v63 }
 0x121   :  { %1744 = vmatprep.subr.bf16.mxu1 %v1743_v10  ;;  %v1701_v9 = vpack.c.bf16 %v562_v5, %v546_v4  ;;  %v1765_v10 = vpack.c.bf16 %v564_v8, %v548_v7 }
 0x123   :  { %1682 = vmatpush1.bf16.msra.mxu0 %v1681_v18  ;;  %v1135_v18 = vshrl.u32 %v1134_v17, 7 }
 0x124   :  { %1746 = vmatpush1.bf16.msra.mxu1 %v1745_v19  ;;  %1684 = vmatprep.subr.bf16.mxu0 %v1683_v20 }
 0x125   :  { %1748 = vmatprep.subr.bf16.mxu1 %v1747_v24  ;;  %v1140_v19 = vand.u32 3, %v1135_v18  ;;  %v1178_v51 = vsub.s32 0, %v1135_v18  ;;  %v1186_v53 = vsub.s32 2, %v1135_v18 }
 0x127   :  { %1686 = vmatpush1.bf16.msra.mxu0 %v1685_v30  ;;  %vm1148_vm0 = vcmp.eq.s32.totalorder %v1140_v19, 0  ;;  %vm1157_vm1 = vcmp.eq.s32.totalorder %v1140_v19, 3  ;;  %v1187_v57 = vrot.slane %v1174_v52, %v1186_v53  ;;  %v1222_v4 = vrot.slane %v1209_v60, %v1186_v53 }
 0x128   :  { %1750 = vmatpush1.bf16.msra.mxu1 %v1749_v31  ;;  %1688 = vmatprep.subr.bf16.mxu0 %v1687_v32 }
 0x129   :  { %1752 = vmatprep.subr.bf16.mxu1 %v1751_v37 }
 0x12b   :  { %1690 = vmatpush1.bf16.msra.mxu0 %v1689_v43 }
 0x12c   :  { %1754 = vmatpush1.bf16.msra.mxu1 %v1753_v44  ;;  %1692 = vmatprep.subr.bf16.mxu0 %v1691_v45 }
 0x12d   :  { %1756 = vmatprep.subr.bf16.mxu1 %v1755_v48 }
 0x12f   :  { %1694 = vmatpush1.bf16.msra.mxu0 %v1693_v54  ;;  %v1182_v54 = vsub.s32 1, %v1135_v18 }
 0x130   :  { %1758 = vmatpush1.bf16.msra.mxu1 %v1757_v55  ;;  %1696 = vmatprep.subr.bf16.mxu0 %v1695_v56  ;;  %v1190_v55 = vsub.s32 3, %v1135_v18  ;;  %v1179_v56 = vrot.slane %v1174_v52, %v1178_v51 }
 0x131   :  { %1760 = vmatprep.subr.bf16.mxu1 %v1759_v59  ;;  %v1183_v58 = vrot.slane %v1174_v52, %v1182_v54 }
 0x132   :  { %v1191_v16 = vrot.slane %v1174_v52, %v1190_v55 }
 0x133   :  { %1698 = vmatpush1.bf16.msra.mxu0 %v1697_v1  ;;  %v1214_v1 = vrot.slane %v1209_v60, %v1178_v51 }
 0x134   :  { %1762 = vmatpush1.bf16.msra.mxu1 %v1761_v2  ;;  %1700 = vmatprep.subr.bf16.mxu0 %v1699_v3 }
 0x135   :  { %1764 = vmatprep.subr.bf16.mxu1 %v1763_v6  ;;  %v1218_v6 = vrot.slane %v1209_v60, %v1182_v54 }
 0x137   :  { %1702 = vmatpush1.bf16.msra.mxu0 %v1701_v9 }
 0x138   :  { %1766 = vmatpush1.bf16.msra.mxu1 %v1765_v10 }
 0x13a   :  { %1057 = vmatmul.mubr.f32.vlgmr.msra.gmra.mrb[6].mxu0 %v1945_v33 }
 0x13b   :  { %1128 = vmatmul.mubr.f32.vlgmr.msra.gmra.mrb[6].mxu1 %v1945_v33 }
 0x14d   :  { %v632_v11 = vpop.f32.mrb[0].mxu0 }
 0x14e   :  { %v703_v12 = vpop.f32.mrb[0].mxu1  ;;  %v634_v13 = vpop.f32.mrb[1].mxu0 }
 0x14f   :  { %v705_v14 = vpop.f32.mrb[1].mxu1 }
 0x18d   :  { %v774_v20 = vpop.f32.mrb[2].mxu0 }
 0x18e   :  { %v1149_v21 = vrot.slane %v774_v20, 7  ;;  %v845_v22 = vpop.f32.mrb[2].mxu1  ;;  %v776_v23 = vpop.f32.mrb[3].mxu0 }
 0x18f   :  { %v1151_v24 = vrot.slane %v845_v22, 7  ;;  %v1150_v25 = vrot.slane %v776_v23, 7  ;;  %v847_v26 = vpop.f32.mrb[3].mxu1 }
 0x190   :  { %v1153_v27 = vsel %vm1148_vm0, 0.0, %v1149_v21  ;;  %v1152_v28 = vrot.slane %v847_v26, 7 }
 0x191   :  { %v1166_v29 = vadd.f32 %v1153_v27, %v632_v11  ;;  %v1155_v30 = vsel %vm1148_vm0, 0.0, %v1151_v24  ;;  %v1154_v33 = vsel %vm1148_vm0, 0.0, %v1150_v25  ;;  %v1226_v11 = vrot.slane %v1209_v60, %v1190_v55 }
 0x192   :  { %v1168_v31 = vadd.f32 %v1155_v30, %v703_v12  ;;  %v1167_v32 = vadd.f32 %v1154_v33, %v634_v13  ;;  %v1156_v34 = vsel %vm1148_vm0, 0.0, %v1152_v28 }
 0x193   :  { %v1169_v35 = vadd.f32 %v1156_v34, %v705_v14 }
 0x1cd   :  { %v916_v36 = vpop.f32.mrb[4].mxu0 }
 0x1ce   :  { %v1158_v37 = vrot.slane %v916_v36, 1  ;;  %v987_v38 = vpop.f32.mrb[4].mxu1  ;;  %v918_v39 = vpop.f32.mrb[5].mxu0 }
 0x1cf   :  { %v1160_v40 = vrot.slane %v987_v38, 1  ;;  %v1159_v41 = vrot.slane %v918_v39, 1  ;;  %v989_v42 = vpop.f32.mrb[5].mxu1 }
 0x1d0   :  { %v1162_v43 = vsel %vm1157_vm1, 0.0, %v1158_v37  ;;  %v1161_v44 = vrot.slane %v989_v42, 1 }
 0x1d1   :  { %v1170_v45 = vadd.f32 %v1166_v29, %v1162_v43  ;;  %v1164_v46 = vsel %vm1157_vm1, 0.0, %v1160_v40  ;;  %v1163_v15 = vsel %vm1157_vm1, 0.0, %v1159_v41 }
 0x1d2   :  { %v1172_v47 = vadd.f32 %v1168_v31, %v1164_v46  ;;  %v1171_v48 = vadd.f32 %v1167_v32, %v1163_v15  ;;  %v1165_v49 = vsel %vm1157_vm1, 0.0, %v1161_v44 }
 0x1d3   :  { %v1173_v50 = vadd.f32 %v1169_v35, %v1165_v49  ;;  %v1196_v59 = vadd.f32 %v1179_v56, %v1170_v45 }
 0x1d4   :  { %v1198_v61 = vadd.f32 %v1187_v57, %v1172_v47  ;;  %v1197_v62 = vadd.f32 %v1183_v58, %v1171_v48 }
 0x1d5   :  { %v1199_v63 = vadd.f32 %v1191_v16, %v1173_v50  ;;  %v1200_v0 = vmax.f32 %v1196_v59, 0.0 }
 0x1d6   :  { %v1202_v3 = vmax.f32 %v1198_v61, 0.0  ;;  %v1201_v5 = vmax.f32 %v1197_v62, 0.0 }
 0x1d7   :  { %v1203_v10 = vmax.f32 %v1199_v63, 0.0 }
 0x20d   :  { %v1058_v2 = vpop.f32.mrb[6].mxu0 }
 0x20e   :  { %v1204_v7 = vadd.f32 %v1200_v0, %v1058_v2  ;;  %v1129_v8 = vpop.f32.mrb[6].mxu1  ;;  %v1060_v9 = vpop.f32.mrb[7].mxu0 }
 0x20f   :  { %v1206_v12 = vadd.f32 %v1202_v3, %v1129_v8  ;;  %v1205_v13 = vadd.f32 %v1201_v5, %v1060_v9  ;;  %v1131_v14 = vpop.f32.mrb[7].mxu1 }
 0x210   :  { %v1231_v17 = vadd.f32 %v1214_v1, %v1204_v7  ;;  %v1207_v18 = vadd.f32 %v1203_v10, %v1131_v14 }
 0x211   :  { %v1233_v19 = vadd.f32 %v1222_v4, %v1206_v12  ;;  %v1232_v20 = vadd.f32 %v1218_v6, %v1205_v13 }
 0x212   :  { %1235 = vst [vmem:[#allocation8] sm:$0xff] %v1231_v17  ;;  %v1234_v21 = vadd.f32 %v1226_v11, %v1207_v18 }
 0x213   :  { %1237 = vst [vmem:[#allocation8 + $0x10] sm:$0xff] %v1233_v19  ;;  %1236 = vst [vmem:[#allocation8 + $0x8] sm:$0xff] %v1232_v20 }
 0x214   :  { %1238 = vst [vmem:[#allocation8 + $0x18] sm:$0xff] %v1234_v21 }
 0x215   :  { %1852 = shalt.err (!%p1849_p0)
}
 0x216   :  { %s1853_s25 = scalar_lea.hbm %s1966_s3, 512 }
 0x217   :  { %p1854_p1 = scmp.ne.s32.totalorder %s1966_s3, %s1853_s25  ;;  %p1857_p2 = scmp.lt.u32.totalorder %s1853_s25, %s1966_s3 }
 0x219   :  { %p1859_p3 = pnand %p1857_p2, %p1854_p1 }
 0x21b   :  { %1862 = shalt.err (!%p1859_p3)
}
 0x21c   :  { %1248 = dma.vmem_to_hbm [thread:$0]  %s1246_s21, 512, %s1966_s3, [#allocation4]  }
 0x21d   :  { %1867 = dma.done.wait [#allocation4], 512  }
 0x21e   :  { %1868 = vsyncadd [#allocation4], 4294966784 }
 0x21f   :  { %1252 = vsyncpa [#allocation3], 1 }
 0x220   :  { %1253 = vsyncpa [#allocation6], 1 }
 0x221   :  { %1254 = vsyncpa [#allocation4], 1 }

</bundles_post_ra>
